<compile_context>
chip_gen: v7x
topology: tpu7x:2x2x1
jax: 0.10.0
libtpu: 0.0.40
codegen_flags: <defaults>
</compile_context>

<pallas_src>
import functools

import jax
import jax.numpy as jnp
from jax.experimental import pallas as pl
from jax.experimental.pallas import tpu as pltpu


def _pair(v):
    return (v, v) if isinstance(v, int) else tuple(v)


def _round_up(x, m):
    return (x + m - 1) // m * m


def _vmem_limit_bytes():
    """Generation-aware VMEM budget: leave headroom under the physical per-TC capacity."""
    cap = 128 * 1024 * 1024
    try:
        cap = int(pltpu.get_tpu_info().vmem_capacity_bytes)
    except Exception:
        pass
    if cap <= 64 * 1024 * 1024:          # v7x-class TC (64 MiB): keep double buffers in budget
        return 44 * 1024 * 1024
    return 100 * 1024 * 1024             # v5e / v6e (128 MiB)


def _pick_row_tile(hout, wout_pad, *, k, itemsize, target_m=1024,
                   max_patch_bytes=8 * 1024 * 1024):
    """Largest divisor of hout whose tile M = th*wout_pad stays within the ~1024-row
    HBM-roofline sweet spot and the im2col patch-scratch budget."""
    budget = max(128, min(target_m, max_patch_bytes // max(1, k * itemsize)))
    best = None
    for th in range(1, hout + 1):
        if hout % th:
            continue
        m = th * wout_pad
        if m <= budget or best is None:
            best = th
        if m >= budget:
            break
    return best


def _conv2d_im2col_kernel(x_ref, w_ref, b_ref, o_ref, patch_ref, *, th, kh_kw, stride):
    # x_ref:     (Hp, Wp_pad, Cin)  padded NHWC image of one batch element (VMEM resident)
    # w_ref:     (K, Cpad)          im2col weights, K = KH*KW*Cin, Cout zero-padded to Cpad
    # b_ref:     (1, Cpad)          f32 bias (zero-padded)
    # o_ref:     (M, Cpad)          lane-dense output tile, M = th * Wout_pad
    # patch_ref: (M, K)             im2col patch scratch (native activation dtype)
    KH, KW = kh_kw
    sh, sw = stride
    Cin = x_ref.shape[-1]
    M, _ = o_ref.shape
    wout = M // th

    t = pl.program_id(1)
    row0 = t * (th * sh)  # first padded-input row touched by this tile at kh == 0

    # --- im2col: pack all KH*KW*Cin taps onto the lane axis of one patch (static unroll) ---
    for kh in range(KH):
        rows = pl.ds(row0 + kh, th) if sh == 1 else pl.ds(row0 + kh, th, stride=sh)
        for kw in range(KW):
            cols = pl.ds(kw, wout) if sw == 1 else pl.ds(kw, wout, stride=sw)
            k0 = (kh * KW + kw) * Cin
            # (th, wout, Cin) -> (M, Cin) is a no-op collapse because wout % 8 == 0.
            patch_ref[:, pl.ds(k0, Cin)] = x_ref[rows, cols, :].reshape(M, Cin)

    # --- one MXU matmul with contraction K = KH*KW*Cin; vreg-resident single epilogue ---
    acc = jnp.dot(patch_ref[...], w_ref[...], preferred_element_type=jnp.float32)
    acc = acc + b_ref[...]
    o_ref[...] = acc.astype(o_ref.dtype)


def conv2d_nhwc(x_nhwc, w_hwio, bias, *, stride=(1, 1), padding=(1, 1)):
    """NHWC fast path. x: (N,H,W,Cin), w: (KH,KW,Cin,Cout) -> (N,Hout,Wout,Cout)."""
    N, H, W, Cin = x_nhwc.shape
    KH, KW, _, Cout = w_hwio.shape
    sh, sw = _pair(stride)
    ph, pw = _pair(padding)

    Hp = H + 2 * ph
    Wp = W + 2 * pw
    Hout = (Hp - KH) // sh + 1
    Wout = (Wp - KW) // sw + 1

    # Lane-dense output channels; sublane-aligned output width (keeps every in-kernel
    # reshape a layout no-op and the output stores full-lane / full-sublane).
    Cpad = _round_up(Cout, 128)
    Wout_pad = _round_up(Wout, 8)
    Wp_pad = max(Wp, (Wout_pad - 1) * sw + KW)

    K = KH * KW * Cin
    itemsize = jnp.dtype(x_nhwc.dtype).itemsize

    if bias is None:
        bias = jnp.zeros((Cout,), jnp.float32)

    # Wrapper glue (fuses into one XLA pass under jit).
    x_pad = jnp.pad(x_nhwc, ((0, 0), (ph, ph), (pw, pw + (Wp_pad - Wp)), (0, 0)))
    w2d = w_hwio.reshape(K, Cout)                      # row index = (kh*KW + kw)*Cin + c
    w2d = jnp.pad(w2d, ((0, 0), (0, Cpad - Cout)))
    b_pad = jnp.pad(bias.astype(jnp.float32), (0, Cpad - Cout)).reshape(1, Cpad)

    TH = _pick_row_tile(Hout, Wout_pad, k=K, itemsize=itemsize)
    n_row_tiles = Hout // TH
    M = TH * Wout_pad

    kernel = functools.partial(_conv2d_im2col_kernel, th=TH, kh_kw=(KH, KW),
                               stride=(sh, sw))

    flops = 2 * N * Hout * Wout * Cout * Cin * KH * KW
    bytes_accessed = (x_pad.size * itemsize + w2d.size * itemsize
                      + N * n_row_tiles * M * Cpad * itemsize)

    out = pl.pallas_call(
        kernel,
        out_shape=jax.ShapeDtypeStruct((N, n_row_tiles * M, Cpad), x_nhwc.dtype),
        grid=(N, n_row_tiles),
        in_specs=[
            pl.BlockSpec((None, Hp, Wp_pad, Cin), lambda n, t: (n, 0, 0, 0)),
            pl.BlockSpec((K, Cpad), lambda n, t: (0, 0)),
            pl.BlockSpec((1, Cpad), lambda n, t: (0, 0)),
        ],
        out_specs=pl.BlockSpec((None, M, Cpad), lambda n, t: (n, t, 0)),
        scratch_shapes=[pltpu.VMEM((M, K), x_nhwc.dtype)],
        compiler_params=pltpu.CompilerParams(
            dimension_semantics=("parallel", "parallel"),
            vmem_limit_bytes=_vmem_limit_bytes()),
        cost_estimate=pl.CostEstimate(flops=flops, transcendentals=0,
                                      bytes_accessed=bytes_accessed),
    )(x_pad, w2d, b_pad)

    out = out.reshape(N, Hout, Wout_pad, Cpad)[:, :, :Wout, :Cout]
    return out


def conv_block_forward(x_nchw, weight_oihw, bias, *, stride=(1, 1), padding=(1, 1)):
    """ConvBlock.forward (== nn.Conv2d), NCHW public API.

    When ConvBlocks are chained, call conv2d_nhwc directly and keep the NHWC slab between
    layers to skip these layout passes.
    """
    x_nhwc = jnp.transpose(x_nchw, (0, 2, 3, 1))                 # (N, H, W, Cin)
    w_hwio = jnp.transpose(weight_oihw, (2, 3, 1, 0))            # (KH, KW, Cin, Cout)
    y = conv2d_nhwc(x_nhwc, w_hwio, bias, stride=stride, padding=padding)
    return jnp.transpose(y, (0, 3, 1, 2))                        # (N, Cout, Hout, Wout)


if __name__ == "__main__":
    key = jax.random.PRNGKey(0)
    kx, kw, kb = jax.random.split(key, 3)

    # ConvBlock(4, 8, kernel_size=3, padding=1) on a (2, 4, 16, 16) NCHW input.
    N, Cin, H, W = 2, 4, 16, 16
    Cout, KH, KW = 8, 3, 3
    stride, padding = (1, 1), (1, 1)

    x = jax.random.normal(kx, (N, Cin, H, W), dtype=jnp.float32)
    fan_in = Cin * KH * KW
    weight = jax.random.uniform(kw, (Cout, Cin, KH, KW), jnp.float32,
                                minval=-1.0, maxval=1.0) / jnp.sqrt(fan_in)
    bias = jax.random.uniform(kb, (Cout,), jnp.float32,
                              minval=-1.0, maxval=1.0) / jnp.sqrt(fan_in)

    fwd = jax.jit(functools.partial(conv_block_forward, stride=stride, padding=padding))
    y = fwd(x, weight, bias)
    y = jax.block_until_ready(y)

    # Pure-JAX reference (same semantics as torch.nn.Conv2d, NCHW).
    y_ref = jax.lax.conv_general_dilated(
        x, weight, window_strides=stride, padding=[padding, padding],
        dimension_numbers=("NCHW", "OIHW", "NCHW"),
    ) + bias.reshape(1, Cout, 1, 1)

    assert y.shape == (N, Cout, H, W), y.shape
    assert jnp.allclose(y, y_ref, atol=1e-4, rtol=1e-4), float(jnp.max(jnp.abs(y - y_ref)))

    print("KERNEL_OK")
</pallas_src>

<mosaic_0001>
module attributes {stable_mosaic.version = 11 : i64} {
  func.func @_conv2d_im2col_kernel(%arg0: i32, %arg1: i32, %arg2: memref<1x18x18x4xf32, #tpu.memory_space<vmem>>, %arg3: memref<36x128xf32, #tpu.memory_space<vmem>>, %arg4: memref<1x128xf32, #tpu.memory_space<vmem>>, %arg5: memref<1x256x128xf32, #tpu.memory_space<vmem>>, %arg6: memref<256x36xf32, #tpu.memory_space<vmem>>) attributes {dimension_semantics = [#tpu.dimension_semantics<parallel>, #tpu.dimension_semantics<parallel>], iteration_bounds = array<i64: 2, 1>, scalar_prefetch = 0 : i64, scratch_operands = 1 : i64, tpu.core_type = #tpu.core_type<tc>, window_params = [{transform_indices = @transform_0, window_bounds = array<i64: 1, 18, 18, 4>}, {pipeline_mode = #tpu.pipeline_mode<synchronous>, transform_indices = @transform_1, window_bounds = array<i64: 36, 128>}, {pipeline_mode = #tpu.pipeline_mode<synchronous>, transform_indices = @transform_2, window_bounds = array<i64: 1, 128>}, {transform_indices = @transform_3, window_bounds = array<i64: 1, 256, 128>}]} {
    %c16_i32 = arith.constant 16 : i32
    %0 = arith.muli %arg1, %c16_i32 : i32
    %c0_i32 = arith.constant 0 : i32
    %1 = arith.addi %0, %c0_i32 : i32
    %c0 = arith.constant 0 : index
    %2 = arith.index_cast %1 : i32 to index
    %c0_0 = arith.constant 0 : index
    %c0_1 = arith.constant 0 : index
    %3 = vector.load %arg2[%c0, %2, %c0_0, %c0_1] : memref<1x18x18x4xf32, #tpu.memory_space<vmem>>, vector<1x16x16x4xf32>
    %4 = vector.shape_cast %3 : vector<1x16x16x4xf32> to vector<16x16x4xf32>
    %5 = vector.shape_cast %4 : vector<16x16x4xf32> to vector<256x4xf32>
    %c0_2 = arith.constant 0 : index
    %c0_3 = arith.constant 0 : index
    %6 = vector.load %arg6[%c0_2, %c0_3] : memref<256x36xf32, #tpu.memory_space<vmem>>, vector<256x4xf32>
    tpu.vector_store %arg6[%c0_2, %c0_3], %5 {strides = array<i32>} : memref<256x36xf32, #tpu.memory_space<vmem>>, vector<256x4xf32>,
    %c0_4 = arith.constant 0 : index
    %7 = arith.index_cast %1 : i32 to index
    %c1 = arith.constant 1 : index
    %c0_5 = arith.constant 0 : index
    %8 = vector.load %arg2[%c0_4, %7, %c1, %c0_5] : memref<1x18x18x4xf32, #tpu.memory_space<vmem>>, vector<1x16x16x4xf32>
    %9 = vector.shape_cast %8 : vector<1x16x16x4xf32> to vector<16x16x4xf32>
    %10 = vector.shape_cast %9 : vector<16x16x4xf32> to vector<256x4xf32>
    %c0_6 = arith.constant 0 : index
    %c4 = arith.constant 4 : index
    %11 = vector.load %arg6[%c0_6, %c4] : memref<256x36xf32, #tpu.memory_space<vmem>>, vector<256x4xf32>
    tpu.vector_store %arg6[%c0_6, %c4], %10 {strides = array<i32>} : memref<256x36xf32, #tpu.memory_space<vmem>>, vector<256x4xf32>,
    %c0_7 = arith.constant 0 : index
    %12 = arith.index_cast %1 : i32 to index
    %c2 = arith.constant 2 : index
    %c0_8 = arith.constant 0 : index
    %13 = vector.load %arg2[%c0_7, %12, %c2, %c0_8] : memref<1x18x18x4xf32, #tpu.memory_space<vmem>>, vector<1x16x16x4xf32>
    %14 = vector.shape_cast %13 : vector<1x16x16x4xf32> to vector<16x16x4xf32>
    %15 = vector.shape_cast %14 : vector<16x16x4xf32> to vector<256x4xf32>
    %c0_9 = arith.constant 0 : index
    %c8 = arith.constant 8 : index
    %16 = vector.load %arg6[%c0_9, %c8] : memref<256x36xf32, #tpu.memory_space<vmem>>, vector<256x4xf32>
    tpu.vector_store %arg6[%c0_9, %c8], %15 {strides = array<i32>} : memref<256x36xf32, #tpu.memory_space<vmem>>, vector<256x4xf32>,
    %c1_i32 = arith.constant 1 : i32
    %17 = arith.addi %0, %c1_i32 : i32
    %c0_10 = arith.constant 0 : index
    %18 = arith.index_cast %17 : i32 to index
    %c0_11 = arith.constant 0 : index
    %c0_12 = arith.constant 0 : index
    %19 = vector.load %arg2[%c0_10, %18, %c0_11, %c0_12] : memref<1x18x18x4xf32, #tpu.memory_space<vmem>>, vector<1x16x16x4xf32>
    %20 = vector.shape_cast %19 : vector<1x16x16x4xf32> to vector<16x16x4xf32>
    %21 = vector.shape_cast %20 : vector<16x16x4xf32> to vector<256x4xf32>
    %c0_13 = arith.constant 0 : index
    %c12 = arith.constant 12 : index
    %22 = vector.load %arg6[%c0_13, %c12] : memref<256x36xf32, #tpu.memory_space<vmem>>, vector<256x4xf32>
    tpu.vector_store %arg6[%c0_13, %c12], %21 {strides = array<i32>} : memref<256x36xf32, #tpu.memory_space<vmem>>, vector<256x4xf32>,
    %c0_14 = arith.constant 0 : index
    %23 = arith.index_cast %17 : i32 to index
    %c1_15 = arith.constant 1 : index
    %c0_16 = arith.constant 0 : index
    %24 = vector.load %arg2[%c0_14, %23, %c1_15, %c0_16] : memref<1x18x18x4xf32, #tpu.memory_space<vmem>>, vector<1x16x16x4xf32>
    %25 = vector.shape_cast %24 : vector<1x16x16x4xf32> to vector<16x16x4xf32>
    %26 = vector.shape_cast %25 : vector<16x16x4xf32> to vector<256x4xf32>
    %c0_17 = arith.constant 0 : index
    %c16 = arith.constant 16 : index
    %27 = vector.load %arg6[%c0_17, %c16] : memref<256x36xf32, #tpu.memory_space<vmem>>, vector<256x4xf32>
    tpu.vector_store %arg6[%c0_17, %c16], %26 {strides = array<i32>} : memref<256x36xf32, #tpu.memory_space<vmem>>, vector<256x4xf32>,
    %c0_18 = arith.constant 0 : index
    %28 = arith.index_cast %17 : i32 to index
    %c2_19 = arith.constant 2 : index
    %c0_20 = arith.constant 0 : index
    %29 = vector.load %arg2[%c0_18, %28, %c2_19, %c0_20] : memref<1x18x18x4xf32, #tpu.memory_space<vmem>>, vector<1x16x16x4xf32>
    %30 = vector.shape_cast %29 : vector<1x16x16x4xf32> to vector<16x16x4xf32>
    %31 = vector.shape_cast %30 : vector<16x16x4xf32> to vector<256x4xf32>
    %c0_21 = arith.constant 0 : index
    %c20 = arith.constant 20 : index
    %32 = vector.load %arg6[%c0_21, %c20] : memref<256x36xf32, #tpu.memory_space<vmem>>, vector<256x4xf32>
    tpu.vector_store %arg6[%c0_21, %c20], %31 {strides = array<i32>} : memref<256x36xf32, #tpu.memory_space<vmem>>, vector<256x4xf32>,
    %c2_i32 = arith.constant 2 : i32
    %33 = arith.addi %0, %c2_i32 : i32
    %c0_22 = arith.constant 0 : index
    %34 = arith.index_cast %33 : i32 to index
    %c0_23 = arith.constant 0 : index
    %c0_24 = arith.constant 0 : index
    %35 = vector.load %arg2[%c0_22, %34, %c0_23, %c0_24] : memref<1x18x18x4xf32, #tpu.memory_space<vmem>>, vector<1x16x16x4xf32>
    %36 = vector.shape_cast %35 : vector<1x16x16x4xf32> to vector<16x16x4xf32>
    %37 = vector.shape_cast %36 : vector<16x16x4xf32> to vector<256x4xf32>
    %c0_25 = arith.constant 0 : index
    %c24 = arith.constant 24 : index
    %38 = vector.load %arg6[%c0_25, %c24] : memref<256x36xf32, #tpu.memory_space<vmem>>, vector<256x4xf32>
    tpu.vector_store %arg6[%c0_25, %c24], %37 {strides = array<i32>} : memref<256x36xf32, #tpu.memory_space<vmem>>, vector<256x4xf32>,
    %c0_26 = arith.constant 0 : index
    %39 = arith.index_cast %33 : i32 to index
    %c1_27 = arith.constant 1 : index
    %c0_28 = arith.constant 0 : index
    %40 = vector.load %arg2[%c0_26, %39, %c1_27, %c0_28] : memref<1x18x18x4xf32, #tpu.memory_space<vmem>>, vector<1x16x16x4xf32>
    %41 = vector.shape_cast %40 : vector<1x16x16x4xf32> to vector<16x16x4xf32>
    %42 = vector.shape_cast %41 : vector<16x16x4xf32> to vector<256x4xf32>
    %c0_29 = arith.constant 0 : index
    %c28 = arith.constant 28 : index
    %43 = vector.load %arg6[%c0_29, %c28] : memref<256x36xf32, #tpu.memory_space<vmem>>, vector<256x4xf32>
    tpu.vector_store %arg6[%c0_29, %c28], %42 {strides = array<i32>} : memref<256x36xf32, #tpu.memory_space<vmem>>, vector<256x4xf32>,
    %c0_30 = arith.constant 0 : index
    %44 = arith.index_cast %33 : i32 to index
    %c2_31 = arith.constant 2 : index
    %c0_32 = arith.constant 0 : index
    %45 = vector.load %arg2[%c0_30, %44, %c2_31, %c0_32] : memref<1x18x18x4xf32, #tpu.memory_space<vmem>>, vector<1x16x16x4xf32>
    %46 = vector.shape_cast %45 : vector<1x16x16x4xf32> to vector<16x16x4xf32>
    %47 = vector.shape_cast %46 : vector<16x16x4xf32> to vector<256x4xf32>
    %c0_33 = arith.constant 0 : index
    %c32 = arith.constant 32 : index
    %48 = vector.load %arg6[%c0_33, %c32] : memref<256x36xf32, #tpu.memory_space<vmem>>, vector<256x4xf32>
    tpu.vector_store %arg6[%c0_33, %c32], %47 {strides = array<i32>} : memref<256x36xf32, #tpu.memory_space<vmem>>, vector<256x4xf32>,
    %c0_34 = arith.constant 0 : index
    %c0_35 = arith.constant 0 : index
    %49 = vector.load %arg6[%c0_34, %c0_35] : memref<256x36xf32, #tpu.memory_space<vmem>>, vector<256x36xf32>
    %c0_36 = arith.constant 0 : index
    %c0_37 = arith.constant 0 : index
    %50 = vector.load %arg3[%c0_36, %c0_37] : memref<36x128xf32, #tpu.memory_space<vmem>>, vector<36x128xf32>
    %cst = arith.constant dense<0.000000e+00> : vector<256x128xf32>
    %51 = tpu.matmul %49, %50, %cst {dimension_numbers = #tpu.dot_dimension_numbers<[1], [0], [0], [1], [0, 0, 1, 1], [], []>} : vector<256x36xf32>, vector<36x128xf32>, vector<256x128xf32> -> vector<256x128xf32>
    %c0_38 = arith.constant 0 : index
    %c0_39 = arith.constant 0 : index
    %52 = vector.load %arg4[%c0_38, %c0_39] : memref<1x128xf32, #tpu.memory_space<vmem>>, vector<1x128xf32>
    %53 = vector.broadcast %52 : vector<1x128xf32> to vector<256x128xf32>
    %54 = arith.addf %51, %53 : vector<256x128xf32>
    %c0_40 = arith.constant 0 : index
    %c0_41 = arith.constant 0 : index
    %c0_42 = arith.constant 0 : index
    %55 = vector.load %arg5[%c0_40, %c0_41, %c0_42] : memref<1x256x128xf32, #tpu.memory_space<vmem>>, vector<1x256x128xf32>
    %56 = vector.shape_cast %55 : vector<1x256x128xf32> to vector<256x128xf32>
    %57 = vector.shape_cast %54 : vector<256x128xf32> to vector<1x256x128xf32>
    tpu.vector_store %arg5[%c0_40, %c0_41, %c0_42], %57 {strides = array<i32>} : memref<1x256x128xf32, #tpu.memory_space<vmem>>, vector<1x256x128xf32>,
    return
  }
  func.func @transform_0(%arg0: i32, %arg1: i32) -> (i32, i32, i32, i32) {
    %c0_i32 = arith.constant 0 : i32
    %c0_i32_0 = arith.constant 0 : i32
    %c0_i32_1 = arith.constant 0 : i32
    %c0_i32_2 = arith.constant 0 : i32
    return %arg0, %c0_i32, %c0_i32_0, %c0_i32_1 : i32, i32, i32, i32
  }
  func.func @transform_1(%arg0: i32, %arg1: i32) -> (i32, i32) {
    %c0_i32 = arith.constant 0 : i32
    %c0_i32_0 = arith.constant 0 : i32
    %c0_i32_1 = arith.constant 0 : i32
    return %c0_i32, %c0_i32_0 : i32, i32
  }
  func.func @transform_2(%arg0: i32, %arg1: i32) -> (i32, i32) {
    %c0_i32 = arith.constant 0 : i32
    %c0_i32_0 = arith.constant 0 : i32
    %c0_i32_1 = arith.constant 0 : i32
    return %c0_i32, %c0_i32_0 : i32, i32
  }
  func.func @transform_3(%arg0: i32, %arg1: i32) -> (i32, i32, i32) {
    %c0_i32 = arith.constant 0 : i32
    %c0_i32_0 = arith.constant 0 : i32
    return %arg0, %arg1, %c0_i32 : i32, i32, i32
  }
}

</mosaic_0001>

<bundles_post_ra>
// kernel: conv_block_forward.1
= control target key start
LH: loop header
LB: loop body
LE: loop exit
PB: predicated region body
PF: predicated region fallthrough
CT: control target
= control target key end

     0   :  { %8 = vsyncpa [#allocation4], 0  ;;  %s4373_s0 = inlined_call_operand.hbm [shape: f32[2,18,18,4], index: 0, kind: input, shape index: {}]   ;;  %s4374_s1 = inlined_call_operand.hbm [shape: f32[36,128], index: 1, kind: input, shape index: {}]   ;;  %s4375_s2 = inlined_call_operand.hbm [shape: f32[1,128], index: 2, kind: input, shape index: {}]   ;;  %s4376_s3 = inlined_call_operand.hbm [shape: f32[2,256,128], index: 3, kind: output, shape index: {}]  }
   0x1   :  { %10 = vsyncpa [#allocation4 + $0x1], 0 }
   0x2   :  { %11 = vsyncpa [#allocation7], 0 }
   0x3   :  { %12 = vsyncpa [#allocation5], 0 }
   0x4   :  { %14 = vsyncpa [#allocation5 + $0x1], 0  ;;  %s3038_s12 = smov 0   ;;  %s3040_s13 = smov 0  }
   0x5   :  { %s3042_s14 = smov 0   ;;  %s3044_s15 = smov 0  }
   0x6   :  { %s3046_s16 = smov 0   ;;  %s3048_s17 = smov 0  }
   0x7 LB: > { %s2380_s18 = sadd.s32 4294967295, %s3001_s17   ;;  %s2381_s19 = sadd.s32 4294967294, %s3001_s17   ;;  %s3001_s17 = sphi %s3048_s17, %s20_s17   ;;  %s2997_s16 = sphi %s3046_s16, %s4412_s16   ;;  %s2993_s15 = sphi %s3044_s15, %s4411_s15   ;;  %s2989_s14 = sphi %s3042_s14, %s4410_s14   ;;  %s2985_s13 = sphi %s3040_s13, %s4409_s13   ;;  %s2981_s12 = sphi %s3038_s12, %s4408_s12  }
   0x8   : > { %p52_p0 = scmp.ne.s32.totalorder %s2985_s13, %s2981_s12  ;;  %p3072_p1 = scmp.eq.s32.totalorder %s2380_s18, 0 }
   0x9   : > { %p3076_p2 = scmp.eq.s32.totalorder %s2380_s18, 1  ;;  %p126_p3 = scmp.eq.s32.totalorder %s2381_s19, 1 }
   0xa   : > { %s4387_s20 = scalar_select %p3072_p1, 1, 0 }
   0xb   : > { %p3082_p4 = por %p3072_p1, %p52_p0  ;;  %p2382_p5 = scmp.ge.s32.totalorder %s3001_s17, 1 }
   0xc   : > { %p3087_p6 = por %p126_p3, %p52_p0  ;;  %p133_p7 = scmp.lt.s32.totalorder %s3001_s17, 3 }
   0xd   : > { %s4389_s22 = scalar_select %p3082_p4, 1, 0 }
   0xe   : > { %s4390_s23 = scalar_select %p3087_p6, 1, 0 }
   0xf   : > { %p3092_p8 = pnand %p2382_p5, %p133_p7  ;;  %s3003_s25 = smov [#allocation6]  }
  0x10   : > { %s145_s26 = sshll.u32 %s3003_s25, 4  ;;  %s3004_s28 = smov [#allocation8]   ;;  %s3096_s26 = int_to_ptr.vmem [resolvable:$true] %s145_s26 }
  0x11   : > { %p2747_p9 = pneg %p3092_p8  ;;  %s159_s29 = sshll.u32 %s3004_s28, 4  ;;  %s3107_s29 = int_to_ptr.vmem [resolvable:$true] %s159_s29 }
  0x12   : > { %s2829_s5 = scalar_lea.hbm %s4374_s1, 640 }
  0x13   : > { %p3103_p11 = pnand %p2747_p9, %p3072_p1  ;;  %p2830_p12 = scmp.ne.s32.totalorder %s4374_s1, %s2829_s5 }
  0x14   : > { %p2836_p5 = scmp.lt.u32.totalorder %s2829_s5, %s4374_s1 }
  0x15   : > { %p2831_p13 = pneg %p3103_p11 }
  0x17   : > { %p2832_p0 = pnand %p2831_p13, %p2830_p12 }
  0x19   : > { %p2833_p3 = pneg %p2832_p0 }
  0x1b   : > { %p2838_p7 = pnand %p2836_p5, %p2833_p3 }
  0x1d   : > { %2841 = shalt.err (!%p2838_p7)
}
  0x1e   : > { %s2842_s10 = scalar_lea.vmem %s3096_s26, 640  ;;  %p2850_p1 = scmp.lt.s32.totalorder %s3096_s26, %s3096_s26 }
  0x1f   : > { %p2843_p9 = scmp.ne.s32.totalorder %s3096_s26, %s2842_s10  ;;  %p2851_p12 = scmp.lt.s32.totalorder %s2842_s10, %s2842_s10 }
  0x21   : > { %p2845_p10 = pnand %p2843_p9, %p2831_p13  ;;  %p2852_p0 = por %p2851_p12, %p2850_p1 }
  0x23   : > { %p2846_p6 = pneg %p2845_p10 }
  0x25   : > { %p2853_p4 = pnand %p2852_p0, %p2846_p6 }
  0x27   : > { %2856 = shalt.err (!%p2853_p4)
}
  0x28   : > { %s3005_s11 = smov 128   ;;  %s3006_s18 = smov 8  }
  0x29   : > { %2750 = dma.hbm_to_vmem [thread:$0]  (!%p3103_p11), %s4374_s1, 640, %s3096_s26, [#allocation7], %s3005_s11, %s3005_s11, %s3006_s18  }
  0x2a   : > { %s2857_s4 = scalar_lea.hbm %s4375_s2, 16 }
  0x2b   : > { %p2858_p1 = scmp.ne.s32.totalorder %s4375_s2, %s2857_s4  ;;  %p2864_p10 = scmp.lt.u32.totalorder %s2857_s4, %s4375_s2 }
  0x2d   : > { %p2860_p4 = pnand %p2858_p1, %p2831_p13 }
  0x2f   : > { %p2861_p6 = pneg %p2860_p4 }
  0x31   : > { %p2866_p3 = pnand %p2864_p10, %p2861_p6 }
  0x33   : > { %2869 = shalt.err (!%p2866_p3)
}
  0x34   : > { %s2870_s26 = scalar_lea.vmem %s3107_s29, 16  ;;  %s2877_s9 = scalar_lea.vmem %s3107_s29, 32 }
  0x35   : > { %p2871_p5 = scmp.ne.s32.totalorder %s3107_s29, %s2870_s26  ;;  %p2878_p12 = scmp.lt.s32.totalorder %s3107_s29, %s3107_s29 }
  0x36   : > { %p2879_p0 = scmp.lt.s32.totalorder %s2877_s9, %s2870_s26 }
  0x37   : > { %p2873_p7 = pnand %p2871_p5, %p2831_p13 }
  0x38   : > { %p2880_p1 = por %p2879_p0, %p2878_p12 }
  0x39   : > { %p2874_p9 = pneg %p2873_p7 }
  0x3b   : > { %p2881_p4 = pnand %p2880_p1, %p2874_p9 }
  0x3d   : > { %2884 = shalt.err (!%p2881_p4)
}
  0x3e   : > { %2753 = dma.hbm_to_vmem [thread:$0]  (!%p3103_p11), %s4375_s2, 16, %s3107_s29, [#allocation7]  }
  0x3f   : > { %s32_s25 = sadd.s32 1, %s2997_s16  ;;  %s39_s28 = sadd.s32 1, %s2989_s14 }
  0x40   : > { %p34_p13 = scmp.ge.s32.totalorder %s32_s25, 2  ;;  %p46_p6 = scmp.ne.s32.totalorder %s2989_s14, %s2985_s13 }
  0x41   : > { %p47_p10 = scmp.eq.s32.totalorder %s3001_s17, 0  ;;  %p2764_p3 = scmp.lt.s32.totalorder %s3001_s17, 2 }
  0x42   : > { %s4414_s25 = smov (%p34_p13, %s32_s25), 0  ;;  %p3175_p7 = por %p3076_p2, %p46_p6 }
  0x43   : > { %p48_p5 = por %p47_p10, %p46_p6  ;;  %s36_s30 = ssub.s32 %s2997_s16, %s4414_s25 }
  0x44   : > { %s4393_s27 = scalar_select %p3175_p7, 1, 0 }
  0x45   : > { %s170_s4 = sand.u32 1, %s2989_s14   ;;  %p37_p9 = scmp.eq.s32.totalorder %s36_s30, 0 }
  0x46   : > { %s2732_s29 = smul.u32 432, %s170_s4  ;;  %p3182_p11 = pnand %p2764_p3, %p48_p5 }
  0x47   : > { %s3187_s6 = scalar_select %p37_p9, %s2989_s14, %s39_s28  }
  0x48   : > { %s2733_s7 = smul.u32 6912, %s2997_s16  ;;  %s174_s8 = scalar_lea.vmem [#allocation3], %s2732_s29 }
  0x49   : > { %s181_s26 = sshll.u32 %s174_s8, 4  ;;  %s3197_s19 = scalar_lea.sflag [#allocation4], %s170_s4  ;;  %s3195_s26 = int_to_ptr.vmem [resolvable:$true] %s181_s26 }
  0x4a   : > { %s3193_s10 = scalar_lea.hbm %s4373_s0, %s2733_s7  ;;  %p2887_p12 = pneg %p3182_p11 }
  0x4b   : > { %s2885_s30 = scalar_lea.hbm %s3193_s10, 6912  ;;  %s2890_s7 = scalar_lea.hbm %s4373_s0, 13824 }
  0x4c   : > { %p2886_p2 = scmp.ne.s32.totalorder %s3193_s10, %s2885_s30  ;;  %p2891_p4 = scmp.lt.u32.totalorder %s3193_s10, %s4373_s0 }
  0x4d   : > { %p2892_p13 = scmp.lt.u32.totalorder %s2890_s7, %s2885_s30  ;;  %p2894_p10 = scmp.lt.u32.totalorder %s2885_s30, %s3193_s10 }
  0x4e   : > { %p2888_p0 = pnand %p2887_p12, %p2886_p2 }
  0x4f   : > { %p2893_p6 = por %p2892_p13, %p2891_p4 }
  0x50   : > { %p2889_p1 = pneg %p2888_p0 }
  0x51   : > { %p2895_p3 = por %p2894_p10, %p2893_p6 }
  0x53   : > { %p2896_p5 = pnand %p2895_p3, %p2889_p1 }
  0x55   : > { %2899 = shalt.err (!%p2896_p5)
}
  0x56   : > { %s2900_s4 = scalar_lea.vmem %s3195_s26, 6912  ;;  %s3007_s9 = smov [#allocation3]  }
  0x57   : > { %p2901_p9 = scmp.ne.s32.totalorder %s3195_s26, %s2900_s4  ;;  %s2905_s28 = sshll.u32 %s3007_s9, 4  ;;  %s2906_s28 = int_to_ptr.vmem [resolvable:$false] %s2905_s28 }
  0x58   : > { %s2907_s29 = scalar_lea.vmem %s2906_s28, 13824  ;;  %p2908_p7 = scmp.lt.s32.totalorder %s3195_s26, %s2906_s28 }
  0x59   : > { %p2903_p2 = pnand %p2901_p9, %p2887_p12  ;;  %p2909_p4 = scmp.lt.s32.totalorder %s2907_s29, %s2900_s4 }
  0x5b   : > { %p2904_p0 = pneg %p2903_p2  ;;  %p2910_p13 = por %p2909_p4, %p2908_p7 }
  0x5d   : > { %p2911_p6 = pnand %p2910_p13, %p2904_p0 }
  0x5f   : > { %2914 = shalt.err (!%p2911_p6)
}
  0x60   : > { %2757 = dma.hbm_to_vmem [thread:$0]  (!%p3182_p11), %s3193_s10, 6912, %s3195_s26, %s3197_s19, %s3005_s11, %s3005_s11, %s3006_s18  }
  0x61   : > { %193 = sbr.rel (%p3092_p8) target bundleno = 975 (0x3cf), region = 32 }
  0x68   : > { %s3231_s30 = sand.u32 1, %s2985_s13   ;;  %p4395_p7 = scmp.ne.s32.totalorder %s4389_s22, 0 }
  0x69   : > { %s2734_s7 = smul.u32 432, %s3231_s30  ;;  %s196_s8 = scalar_lea.sflag [#allocation4], %s3231_s30 }
  0x6b   : > { %s3235_s21 = scalar_lea.vmem [#allocation3], %s2734_s7 }
  0x6c   : > { %2968 = dma.done.wait (%p4395_p7), %s196_s8, 6912  }
  0x6d   : > { %2970 = vsyncadd (%p4395_p7), %s196_s8, 4294960384  ;;  %p4396_p11 = scmp.ne.s32.totalorder %s4387_s20, 0 }
  0x6f   : > { %2972 = dma.done.wait (%p4396_p11), [#allocation7], 656  }
  0x70   : > { %2974 = vsyncadd (%p4396_p11), [#allocation7], 4294966640  ;;  %v3246_v0 = vld [vmem:[%s3235_s21 + $0x19] sm:$0xff]  ;;  %v299_v1 = vld [vmem:[%s3235_s21 + $0x1] sm:$0xff]  ;;  %s3008_s22 = smov 4   ;;  %vm266_vm0 = vcmask 31744  }
  0x71   : > { %367 = vrot.lane.b32.xlu1 %v3246_v0, %s3008_s22  ;;  %363 = vrot.lane.b32.xlu0 %v299_v1, %s3008_s22  ;;  %v3253_v2 = vld [vmem:[%s3235_s21 + $0x21] sm:$0xff]  ;;  %v300_v3 = vld [vmem:[%s3235_s21 + $0x9] sm:$0xff]  ;;  %s3009_s20 = smov 8   ;;  %vm459_vm1 = vcmask 64544   ;;  %s3010_s24 = smov 12   ;;  %vm652_vm2 = vcmask 97344  }
  0x72   : > { %v3260_v4 = vld [vmem:[%s3235_s21 + $0x39] sm:$0xff]  ;;  %v3263_v5 = vld [vmem:[%s3235_s21 + $0x31] sm:$0xff]  ;;  %v3273_v7 = vld [vmem:[%s3235_s21 + $0x49] sm:$0xff]  ;;  %s3011_s11 = smov 16   ;;  %s3012_s18 = smov 20   ;;  %vm1990_vm3 = vcmask 1043456  }
  0x73   : > { %v3270_v6 = vld [vmem:[%s3235_s21 + $0x51] sm:$0xff]  ;;  %v308_v8 = vld [vmem:[%s3235_s21 + $0x69] sm:$0xff]  ;;  %v307_v9 = vld [vmem:[%s3235_s21 + $0x61] sm:$0xff]  ;;  %s3013_s5 = smov 24   ;;  %s3014_s26 = smov 28   ;;  %vm848_vm4 = vcmask 130144  }
  0x74   : > { %v310_v10 = vld [vmem:[%s3235_s21 + $0x81] sm:$0xff]  ;;  %v309_v11 = vld [vmem:[%s3235_s21 + $0x79] sm:$0xff]  ;;  %v311_v15 = vld [vmem:[%s3235_s21 + $0x91] sm:$0xff]  ;;  %s3015_s10 = smov 32   ;;  %vm1041_vm5 = vcmask 162944   ;;  %vm1234_vm6 = vcmask 195744  }
  0x75   : > { %369 = vrot.lane.b32.xlu1 %v3253_v2, %s3008_s22  ;;  %365 = vrot.lane.b32.xlu0 %v300_v3, %s3008_s22  ;;  %v3288_v12 = vld [vmem:[%s3235_s21 + $0x18] sm:$0xff]  ;;  %v234_v13 = vld [vmem:[%s3235_s21] sm:$0xff]  ;;  %vm1430_vm7 = vcmask 228544   ;;  %vm1623_vm8 = vcmask 261344   ;;  %vm1816_vm9 = vcmask 294144   ;;  %vm1893_vm10 = vcmask 293888  }
  0x76   : > { %v312_v14 = vld [vmem:[%s3235_s21 + $0x99] sm:$0xff]  ;;  %269 = vst.msk [vmem:[#allocation2 + $0x10] sm:$0xff] %vm266_vm0, %v3288_v12  ;;  %267 = vst.msk [vmem:[#allocation2] sm:$0xff] %vm266_vm0, %v234_v13  ;;  %v235_v17 = vld [vmem:[%s3235_s21 + $0x8] sm:$0xff]  ;;  %s2390_s19 = sshll.u32 %s3231_s30, 8  ;;  %s2622_s9 = sshll.u32 %s2993_s15, 12 }
  0x77   : > { %v3297_v16 = vld [vmem:[%s3235_s21 + $0x20] sm:$0xff]  ;;  %v314_v18 = vld [vmem:[%s3235_s21 + $0xb1] sm:$0xff]  ;;  %268 = vst.msk [vmem:[#allocation2 + $0x8] sm:$0xff] %vm266_vm0, %v235_v17  ;;  %v313_v21 = vld [vmem:[%s3235_s21 + $0xa9] sm:$0xff]  ;;  %s4222_s4 = scalar_lea.vmem [#allocation9], %s2390_s19  ;;  %s4315_s8 = scalar_lea.hbm %s4376_s3, %s2622_s9 }
  0x78   : > { %270 = vst.msk [vmem:[#allocation2 + $0x18] sm:$0xff] %vm266_vm0, %v3297_v16  ;;  %v3305_v19 = vld [vmem:[%s3235_s21 + $0x38] sm:$0xff]  ;;  %v3308_v20 = vld [vmem:[%s3235_s21 + $0x30] sm:$0xff]  ;;  %v3323_v23 = vld [vmem:[%s3235_s21 + $0x48] sm:$0xff]  ;;  %s2267_s28 = sshll.u32 %s4222_s4, 4  ;;  %s2252_s15 = scalar_lea.sflag [#allocation5], %s3231_s30  ;;  %s4319_s28 = int_to_ptr.vmem [resolvable:$true] %s2267_s28 }
  0x79   : > { %373 = vrot.lane.b32.xlu1 %v3260_v4, %s3008_s22  ;;  %371 = vrot.lane.b32.xlu0 %v3263_v5, %s3008_s22  ;;  %272 = vst.msk [vmem:[#allocation2 + $0x28] sm:$0xff] %vm266_vm0, %v3305_v19  ;;  %271 = vst.msk [vmem:[#allocation2 + $0x20] sm:$0xff] %vm266_vm0, %v3308_v20  ;;  %v3318_v22 = vld [vmem:[%s3235_s21 + $0x50] sm:$0xff]  ;;  %v3326_v24 = vld [vmem:[%s3235_s21 + $0x68] sm:$0xff]  ;;  %p4405_p12 = scmp.ne.s32.totalorder %s4393_s27, 0 }
  0x7a   : > { %274 = vst.msk [vmem:[#allocation2 + $0x38] sm:$0xff] %vm266_vm0, %v3318_v22  ;;  %v3329_v25 = vld [vmem:[%s3235_s21 + $0x60] sm:$0xff]  ;;  %273 = vst.msk [vmem:[#allocation2 + $0x30] sm:$0xff] %vm266_vm0, %v3323_v23  ;;  %v3341_v27 = vld [vmem:[%s3235_s21 + $0x78] sm:$0xff] }
  0x7b   : > { %276 = vst.msk [vmem:[#allocation2 + $0x48] sm:$0xff] %vm266_vm0, %v3326_v24  ;;  %275 = vst.msk [vmem:[#allocation2 + $0x40] sm:$0xff] %vm266_vm0, %v3329_v25  ;;  %v3338_v26 = vld [vmem:[%s3235_s21 + $0x80] sm:$0xff]  ;;  %v3344_v28 = vld [vmem:[%s3235_s21 + $0x98] sm:$0xff] }
  0x7c   : > { %v316_v29 = vld [vmem:[%s3235_s21 + $0xc9] sm:$0xff]  ;;  %v315_v30 = vld [vmem:[%s3235_s21 + $0xc1] sm:$0xff]  ;;  %278 = vst.msk [vmem:[#allocation2 + $0x58] sm:$0xff] %vm266_vm0, %v3338_v26  ;;  %277 = vst.msk [vmem:[#allocation2 + $0x50] sm:$0xff] %vm266_vm0, %v3341_v27 }
  0x7d   : > { %377 = vrot.lane.b32.xlu1 %v3270_v6, %s3008_s22  ;;  %375 = vrot.lane.b32.xlu0 %v3273_v7, %s3008_s22  ;;  %280 = vst.msk [vmem:[#allocation2 + $0x68] sm:$0xff] %vm266_vm0, %v3344_v28  ;;  %v3355_v31 = vld [vmem:[%s3235_s21 + $0x90] sm:$0xff]  ;;  %v3361_v33 = vld [vmem:[%s3235_s21 + $0xa8] sm:$0xff] }
  0x7e   : > { %v3358_v32 = vld [vmem:[%s3235_s21 + $0xb0] sm:$0xff]  ;;  %279 = vst.msk [vmem:[#allocation2 + $0x60] sm:$0xff] %vm266_vm0, %v3355_v31  ;;  %281 = vst.msk [vmem:[#allocation2 + $0x70] sm:$0xff] %vm266_vm0, %v3361_v33  ;;  %v3372_v34 = vld [vmem:[%s3235_s21 + $0xc8] sm:$0xff] }
  0x7f   : > { %282 = vst.msk [vmem:[#allocation2 + $0x78] sm:$0xff] %vm266_vm0, %v3358_v32  ;;  %v3375_v35 = vld [vmem:[%s3235_s21 + $0xc0] sm:$0xff]  ;;  %284 = vst.msk [vmem:[#allocation2 + $0x88] sm:$0xff] %vm266_vm0, %v3372_v34  ;;  %v3385_v37 = vld [vmem:[%s3235_s21 + $0xd8] sm:$0xff] }
  0x80   : > { %283 = vst.msk [vmem:[#allocation2 + $0x80] sm:$0xff] %vm266_vm0, %v3375_v35  ;;  %v3382_v36 = vld [vmem:[%s3235_s21 + $0xe0] sm:$0xff]  ;;  %v3388_v38 = vld [vmem:[%s3235_s21 + $0xf8] sm:$0xff]  ;;  %285 = vst.msk [vmem:[#allocation2 + $0x90] sm:$0xff] %vm266_vm0, %v3385_v37 }
  0x81   : > { %381 = vrot.lane.b32.xlu1 %v308_v8, %s3008_s22  ;;  %379 = vrot.lane.b32.xlu0 %v307_v9, %s3008_s22  ;;  %286 = vst.msk [vmem:[#allocation2 + $0x98] sm:$0xff] %vm266_vm0, %v3382_v36  ;;  %288 = vst.msk [vmem:[#allocation2 + $0xa8] sm:$0xff] %vm266_vm0, %v3388_v38  ;;  %v3397_v39 = vld [vmem:[%s3235_s21 + $0xf0] sm:$0xff]  ;;  %v3403_v41 = vld [vmem:[%s3235_s21 + $0x108] sm:$0xff] }
  0x82   : > { %v3400_v40 = vld [vmem:[%s3235_s21 + $0x110] sm:$0xff]  ;;  %287 = vst.msk [vmem:[#allocation2 + $0xa0] sm:$0xff] %vm266_vm0, %v3397_v39  ;;  %289 = vst.msk [vmem:[#allocation2 + $0xb0] sm:$0xff] %vm266_vm0, %v3403_v41  ;;  %v3414_v42 = vld [vmem:[%s3235_s21 + $0xe1] sm:$0xff] }
  0x83   : > { %290 = vst.msk [vmem:[#allocation2 + $0xb8] sm:$0xff] %vm266_vm0, %v3400_v40  ;;  %v3417_v43 = vld [vmem:[%s3235_s21 + $0xd9] sm:$0xff]  ;;  %v3420_v44 = vld [vmem:[%s3235_s21 + $0x128] sm:$0xff]  ;;  %v3437_v47 = vld [vmem:[%s3235_s21 + $0xf1] sm:$0xff] }
  0x84   : > { %v3423_v45 = vld [vmem:[%s3235_s21 + $0x120] sm:$0xff]  ;;  %292 = vst.msk [vmem:[#allocation2 + $0xc8] sm:$0xff] %vm266_vm0, %v3420_v44  ;;  %v3443_v49 = vld [vmem:[%s3235_s21 + $0x138] sm:$0xff]  ;;  %v3457_v51 = vld [vmem:[%s3235_s21 + $0x109] sm:$0xff] }
  0x85   : > { %385 = vrot.lane.b32.xlu1 %v310_v10, %s3008_s22  ;;  %383 = vrot.lane.b32.xlu0 %v309_v11, %s3008_s22  ;;  %291 = vst.msk [vmem:[#allocation2 + $0xc0] sm:$0xff] %vm266_vm0, %v3423_v45  ;;  %v3434_v46 = vld [vmem:[%s3235_s21 + $0xf9] sm:$0xff]  ;;  %293 = vst.msk [vmem:[#allocation2 + $0xd0] sm:$0xff] %vm266_vm0, %v3443_v49  ;;  %v3454_v50 = vld [vmem:[%s3235_s21 + $0x111] sm:$0xff] }
  0x86   : > { %v3440_v48 = vld [vmem:[%s3235_s21 + $0x140] sm:$0xff]  ;;  %v3460_v52 = vld [vmem:[%s3235_s21 + $0x158] sm:$0xff]  ;;  %v3463_v53 = vld [vmem:[%s3235_s21 + $0x150] sm:$0xff] }
  0x87   : > { %294 = vst.msk [vmem:[#allocation2 + $0xd8] sm:$0xff] %vm266_vm0, %v3440_v48  ;;  %296 = vst.msk [vmem:[#allocation2 + $0xe8] sm:$0xff] %vm266_vm0, %v3460_v52  ;;  %v324_v54 = vld [vmem:[%s3235_s21 + $0x129] sm:$0xff]  ;;  %v3475_v55 = vld [vmem:[%s3235_s21 + $0x121] sm:$0xff] }
  0x88   : > { %295 = vst.msk [vmem:[#allocation2 + $0xe0] sm:$0xff] %vm266_vm0, %v3463_v53  ;;  %4397 = vst [vmem:[#allocation13_spill] sm:$0xff] %v3475_v55  ;;  %v3478_v56 = vld [vmem:[%s3235_s21 + $0x170] sm:$0xff]  ;;  %v3481_v57 = vld [vmem:[%s3235_s21 + $0x168] sm:$0xff] }
  0x89   : > { %389 = vrot.lane.b32.xlu1 %v312_v14, %s3008_s22  ;;  %387 = vrot.lane.b32.xlu0 %v311_v15, %s3008_s22  ;;  %298 = vst.msk [vmem:[#allocation2 + $0xf8] sm:$0xff] %vm266_vm0, %v3478_v56  ;;  %297 = vst.msk [vmem:[#allocation2 + $0xf0] sm:$0xff] %vm266_vm0, %v3481_v57  ;;  %v326_v58 = vld [vmem:[%s3235_s21 + $0x141] sm:$0xff]  ;;  %v325_v59 = vld [vmem:[%s3235_s21 + $0x139] sm:$0xff] }
  0x8a   : > { %v328_v60 = vld [vmem:[%s3235_s21 + $0x159] sm:$0xff]  ;;  %v327_v61 = vld [vmem:[%s3235_s21 + $0x151] sm:$0xff]  ;;  %v329_v63 = vld [vmem:[%s3235_s21 + $0x169] sm:$0xff] }
  0x8b   : > { %v330_v62 = vld [vmem:[%s3235_s21 + $0x171] sm:$0xff]  ;;  %v492_v3 = vld [vmem:[%s3235_s21 + $0x2] sm:$0xff]  ;;  %v3510_v9 = vld [vmem:[%s3235_s21 + $0x1a] sm:$0xff] }
  0x8c   : > { %v493_v1 = vld [vmem:[%s3235_s21 + $0xa] sm:$0xff]  ;;  %v3507_v8 = vld [vmem:[%s3235_s21 + $0x22] sm:$0xff]  ;;  %v3517_v10 = vld [vmem:[%s3235_s21 + $0x3a] sm:$0xff] }
  0x8d   : > { %393 = vrot.lane.b32.xlu1 %v314_v18, %s3008_s22  ;;  %391 = vrot.lane.b32.xlu0 %v313_v21, %s3008_s22  ;;  %v3520_v11 = vld [vmem:[%s3235_s21 + $0x32] sm:$0xff]  ;;  %v3530_v14 = vld [vmem:[%s3235_s21 + $0x4a] sm:$0xff] }
  0x8e   : > { %v3527_v13 = vld [vmem:[%s3235_s21 + $0x52] sm:$0xff]  ;;  %v501_v15 = vld [vmem:[%s3235_s21 + $0x6a] sm:$0xff]  ;;  %v3538_v17 = vld [vmem:[%s3235_s21 + $0x62] sm:$0xff] }
  0x8f   : > { %4398 = vst [vmem:[#allocation14_spill] sm:$0xff] %v3538_v17  ;;  %v503_v18 = vld [vmem:[%s3235_s21 + $0x82] sm:$0xff]  ;;  %v502_v21 = vld [vmem:[%s3235_s21 + $0x7a] sm:$0xff] }
  0x91   : > { %397 = vrot.lane.b32.xlu1 %v316_v29, %s3008_s22  ;;  %395 = vrot.lane.b32.xlu0 %v315_v30, %s3008_s22  ;;  %v505_v29 = vld [vmem:[%s3235_s21 + $0x9a] sm:$0xff]  ;;  %v504_v30 = vld [vmem:[%s3235_s21 + $0x92] sm:$0xff] }
  0x95   : > { %401 = vrot.lane.b32.xlu1 %v3414_v42, %s3008_s22  ;;  %399 = vrot.lane.b32.xlu0 %v3417_v43, %s3008_s22 }
  0x99   : > { %405 = vrot.lane.b32.xlu1 %v3434_v46, %s3008_s22  ;;  %403 = vrot.lane.b32.xlu0 %v3437_v47, %s3008_s22 }
  0x9d   : > { %409 = vrot.lane.b32.xlu1 %v3454_v50, %s3008_s22  ;;  %407 = vrot.lane.b32.xlu0 %v3457_v51, %s3008_s22 }
  0xa1   : > { %413 = vrot.lane.b32.xlu1 %v324_v54, %s3008_s22  ;;  %411 = vrot.lane.b32.xlu0 %v3475_v55, %s3008_s22  ;;  %v507_v54 = vld [vmem:[%s3235_s21 + $0xb2] sm:$0xff] }
  0xa5   : > { %417 = vrot.lane.b32.xlu1 %v326_v58, %s3008_s22  ;;  %415 = vrot.lane.b32.xlu0 %v325_v59, %s3008_s22  ;;  %v506_v58 = vld [vmem:[%s3235_s21 + $0xaa] sm:$0xff] }
  0xa6   : > { %v509_v59 = vld [vmem:[%s3235_s21 + $0xca] sm:$0xff] }
  0xa9   : > { %421 = vrot.lane.b32.xlu1 %v328_v60, %s3008_s22  ;;  %419 = vrot.lane.b32.xlu0 %v327_v61, %s3008_s22  ;;  %v508_v60 = vld [vmem:[%s3235_s21 + $0xc2] sm:$0xff] }
  0xaa   : > { %v3560_v61 = vld [vmem:[%s3235_s21 + $0xe2] sm:$0xff] }
  0xad   : > { %425 = vrot.lane.b32.xlu1 %v330_v62, %s3008_s22  ;;  %423 = vrot.lane.b32.xlu0 %v329_v63, %s3008_s22  ;;  %v3563_v62 = vld [vmem:[%s3235_s21 + $0xda] sm:$0xff]  ;;  %s3016_s22 = smov [#allocation9]  }
  0xae   : > { %v3570_v63 = vld [vmem:[%s3235_s21 + $0xfa] sm:$0xff] }
  0xb1   : > { %558 = vrot.lane.b32.xlu1 %v493_v1, %s3009_s20  ;;  %556 = vrot.lane.b32.xlu0 %v492_v3, %s3009_s20  ;;  %v3573_v1 = vld [vmem:[%s3235_s21 + $0xf2] sm:$0xff] }
  0xb2   : > { %v3580_v3 = vld [vmem:[%s3235_s21 + $0x112] sm:$0xff] }
  0xb5   : > { %562 = vrot.lane.b32.xlu1 %v3507_v8, %s3009_s20  ;;  %560 = vrot.lane.b32.xlu0 %v3510_v9, %s3009_s20 }
  0xb9   : > { %566 = vrot.lane.b32.xlu1 %v3517_v10, %s3009_s20  ;;  %564 = vrot.lane.b32.xlu0 %v3520_v11, %s3009_s20 }
  0xbd   : > { %570 = vrot.lane.b32.xlu1 %v3527_v13, %s3009_s20  ;;  %568 = vrot.lane.b32.xlu0 %v3530_v14, %s3009_s20 }
  0xc1   : > { %574 = vrot.lane.b32.xlu1 %v501_v15, %s3009_s20  ;;  %572 = vrot.lane.b32.xlu0 %v3538_v17, %s3009_s20  ;;  %v3583_v15 = vld [vmem:[%s3235_s21 + $0x10a] sm:$0xff] }
  0xc5   : > { %578 = vrot.lane.b32.xlu1 %v503_v18, %s3009_s20  ;;  %576 = vrot.lane.b32.xlu0 %v502_v21, %s3009_s20  ;;  %v3590_v18 = vld [vmem:[%s3235_s21 + $0x12a] sm:$0xff]  ;;  %v3593_v21 = vld [vmem:[%s3235_s21 + $0x122] sm:$0xff] }
  0xc6   : > { %4399 = vst [vmem:[#allocation15_spill] sm:$0xff] %v3590_v18  ;;  %4400 = vst [vmem:[#allocation16_spill] sm:$0xff] %v3593_v21 }
  0xc9   : > { %582 = vrot.lane.b32.xlu1 %v505_v29, %s3009_s20  ;;  %580 = vrot.lane.b32.xlu0 %v504_v30, %s3009_s20  ;;  %v519_v29 = vld [vmem:[%s3235_s21 + $0x142] sm:$0xff]  ;;  %v518_v30 = vld [vmem:[%s3235_s21 + $0x13a] sm:$0xff] }
  0xcd   : > { %586 = vrot.lane.b32.xlu1 %v507_v54, %s3009_s20  ;;  %584 = vrot.lane.b32.xlu0 %v506_v58, %s3009_s20 }
  0xd1   : > { %590 = vrot.lane.b32.xlu1 %v509_v59, %s3009_s20  ;;  %588 = vrot.lane.b32.xlu0 %v508_v60, %s3009_s20  ;;  %v521_v59 = vld [vmem:[%s3235_s21 + $0x15a] sm:$0xff]  ;;  %v520_v60 = vld [vmem:[%s3235_s21 + $0x152] sm:$0xff] }
  0xd5   : > { %594 = vrot.lane.b32.xlu1 %v3560_v61, %s3009_s20  ;;  %592 = vrot.lane.b32.xlu0 %v3563_v62, %s3009_s20 }
  0xd9   : > { %598 = vrot.lane.b32.xlu1 %v3570_v63, %s3009_s20  ;;  %596 = vrot.lane.b32.xlu0 %v3573_v1, %s3009_s20 }
  0xdd   : > { %602 = vrot.lane.b32.xlu1 %v3580_v3, %s3009_s20  ;;  %600 = vrot.lane.b32.xlu0 %v3583_v15, %s3009_s20 }
  0xe1   : > { %606 = vrot.lane.b32.xlu1 %v3590_v18, %s3009_s20  ;;  %604 = vrot.lane.b32.xlu0 %v3593_v21, %s3009_s20  ;;  %v523_v21 = vld [vmem:[%s3235_s21 + $0x172] sm:$0xff] }
  0xe3   : > { %v368_v54 = vpop.permute.xlu1 %367  ;;  %v364_v58 = vpop.permute.xlu0 %363 }
  0xe4   : > { %462 = vst.msk [vmem:[#allocation2 + $0x10] sm:$0xff] %vm459_vm1, %v368_v54  ;;  %460 = vst.msk [vmem:[#allocation2] sm:$0xff] %vm459_vm1, %v364_v58  ;;  %v522_v54 = vld [vmem:[%s3235_s21 + $0x16a] sm:$0xff] }
  0xe5   : > { %610 = vrot.lane.b32.xlu1 %v519_v29, %s3009_s20  ;;  %608 = vrot.lane.b32.xlu0 %v518_v30, %s3009_s20 }
  0xe7   : > { %v370_v18 = vpop.permute.xlu1 %369  ;;  %v366_v17 = vpop.permute.xlu0 %365 }
  0xe8   : > { %463 = vst.msk [vmem:[#allocation2 + $0x18] sm:$0xff] %vm459_vm1, %v370_v18  ;;  %461 = vst.msk [vmem:[#allocation2 + $0x8] sm:$0xff] %vm459_vm1, %v366_v17 }
  0xe9   : > { %614 = vrot.lane.b32.xlu1 %v521_v59, %s3009_s20  ;;  %612 = vrot.lane.b32.xlu0 %v520_v60, %s3009_s20 }
  0xeb   : > { %v374_v55 = vpop.permute.xlu1 %373  ;;  %v372_v58 = vpop.permute.xlu0 %371 }
  0xec   : > { %465 = vst.msk [vmem:[#allocation2 + $0x28] sm:$0xff] %vm459_vm1, %v374_v55  ;;  %464 = vst.msk [vmem:[#allocation2 + $0x20] sm:$0xff] %vm459_vm1, %v372_v58 }
  0xed   : > { %618 = vrot.lane.b32.xlu1 %v523_v21, %s3009_s20  ;;  %616 = vrot.lane.b32.xlu0 %v522_v54, %s3009_s20 }
  0xef   : > { %v378_v29 = vpop.permute.xlu1 %377  ;;  %v376_v18 = vpop.permute.xlu0 %375 }
  0xf0   : > { %467 = vst.msk [vmem:[#allocation2 + $0x38] sm:$0xff] %vm459_vm1, %v378_v29  ;;  %466 = vst.msk [vmem:[#allocation2 + $0x30] sm:$0xff] %vm459_vm1, %v376_v18 }
  0xf1   : > { %754 = vrot.lane.b32.xlu1 %v3297_v16, %s3010_s24  ;;  %752 = vrot.lane.b32.xlu0 %v3288_v12, %s3010_s24 }
  0xf3   : > { %v382_v55 = vpop.permute.xlu1 %381  ;;  %v380_v17 = vpop.permute.xlu0 %379 }
  0xf4   : > { %469 = vst.msk [vmem:[#allocation2 + $0x48] sm:$0xff] %vm459_vm1, %v382_v55  ;;  %468 = vst.msk [vmem:[#allocation2 + $0x40] sm:$0xff] %vm459_vm1, %v380_v17 }
  0xf5   : > { %758 = vrot.lane.b32.xlu1 %v3305_v19, %s3010_s24  ;;  %756 = vrot.lane.b32.xlu0 %v3308_v20, %s3010_s24 }
  0xf7   : > { %v386_v21 = vpop.permute.xlu1 %385  ;;  %v384_v30 = vpop.permute.xlu0 %383 }
  0xf8   : > { %471 = vst.msk [vmem:[#allocation2 + $0x58] sm:$0xff] %vm459_vm1, %v386_v21  ;;  %470 = vst.msk [vmem:[#allocation2 + $0x50] sm:$0xff] %vm459_vm1, %v384_v30 }
  0xf9   : > { %762 = vrot.lane.b32.xlu1 %v3318_v22, %s3010_s24  ;;  %760 = vrot.lane.b32.xlu0 %v3323_v23, %s3010_s24 }
  0xfb   : > { %v390_v12 = vpop.permute.xlu1 %389  ;;  %v388_v16 = vpop.permute.xlu0 %387 }
  0xfc   : > { %473 = vst.msk [vmem:[#allocation2 + $0x68] sm:$0xff] %vm459_vm1, %v390_v12  ;;  %472 = vst.msk [vmem:[#allocation2 + $0x60] sm:$0xff] %vm459_vm1, %v388_v16 }
  0xfd   : > { %766 = vrot.lane.b32.xlu1 %v3326_v24, %s3010_s24  ;;  %764 = vrot.lane.b32.xlu0 %v3329_v25, %s3010_s24 }
  0xff   : > { %v394_v59 = vpop.permute.xlu1 %393  ;;  %v392_v60 = vpop.permute.xlu0 %391 }
 0x100   : > { %475 = vst.msk [vmem:[#allocation2 + $0x78] sm:$0xff] %vm459_vm1, %v394_v59  ;;  %474 = vst.msk [vmem:[#allocation2 + $0x70] sm:$0xff] %vm459_vm1, %v392_v60 }
 0x101   : > { %770 = vrot.lane.b32.xlu1 %v3338_v26, %s3010_s24  ;;  %768 = vrot.lane.b32.xlu0 %v3341_v27, %s3010_s24 }
 0x103   : > { %v398_v54 = vpop.permute.xlu1 %397  ;;  %v396_v58 = vpop.permute.xlu0 %395 }
 0x104   : > { %477 = vst.msk [vmem:[#allocation2 + $0x88] sm:$0xff] %vm459_vm1, %v398_v54  ;;  %476 = vst.msk [vmem:[#allocation2 + $0x80] sm:$0xff] %vm459_vm1, %v396_v58  ;;  %v2422_v54 = vld [vmem:[%s3235_s21 + $0x188] sm:$0xff]  ;;  %v2421_v58 = vld [vmem:[%s3235_s21 + $0x180] sm:$0xff] }
 0x105   : > { %774 = vrot.lane.b32.xlu1 %v3344_v28, %s3010_s24  ;;  %772 = vrot.lane.b32.xlu0 %v3355_v31, %s3010_s24 }
 0x107   : > { %v402_v29 = vpop.permute.xlu1 %401  ;;  %v400_v18 = vpop.permute.xlu0 %399 }
 0x108   : > { %479 = vst.msk [vmem:[#allocation2 + $0x98] sm:$0xff] %vm459_vm1, %v402_v29  ;;  %478 = vst.msk [vmem:[#allocation2 + $0x90] sm:$0xff] %vm459_vm1, %v400_v18 }
 0x109   : > { %778 = vrot.lane.b32.xlu1 %v3358_v32, %s3010_s24  ;;  %776 = vrot.lane.b32.xlu0 %v3361_v33, %s3010_s24 }
 0x10b   : > { %v406_v55 = vpop.permute.xlu1 %405  ;;  %v404_v17 = vpop.permute.xlu0 %403 }
 0x10c   : > { %481 = vst.msk [vmem:[#allocation2 + $0xa8] sm:$0xff] %vm459_vm1, %v406_v55  ;;  %480 = vst.msk [vmem:[#allocation2 + $0xa0] sm:$0xff] %vm459_vm1, %v404_v17 }
 0x10d   : > { %782 = vrot.lane.b32.xlu1 %v3372_v34, %s3010_s24  ;;  %780 = vrot.lane.b32.xlu0 %v3375_v35, %s3010_s24 }
 0x10f   : > { %v410_v28 = vpop.permute.xlu1 %409  ;;  %v408_v31 = vpop.permute.xlu0 %407 }
 0x110   : > { %483 = vst.msk [vmem:[#allocation2 + $0xb8] sm:$0xff] %vm459_vm1, %v410_v28  ;;  %482 = vst.msk [vmem:[#allocation2 + $0xb0] sm:$0xff] %vm459_vm1, %v408_v31 }
 0x111   : > { %786 = vrot.lane.b32.xlu1 %v3382_v36, %s3010_s24  ;;  %784 = vrot.lane.b32.xlu0 %v3385_v37, %s3010_s24 }
 0x113   : > { %v414_v32 = vpop.permute.xlu1 %413  ;;  %v412_v33 = vpop.permute.xlu0 %411 }
 0x114   : > { %485 = vst.msk [vmem:[#allocation2 + $0xc8] sm:$0xff] %vm459_vm1, %v414_v32  ;;  %484 = vst.msk [vmem:[#allocation2 + $0xc0] sm:$0xff] %vm459_vm1, %v412_v33  ;;  %v1881_v33 = vld [vmem:[#allocation6] sm:$0xff] }
 0x115   : > { %790 = vrot.lane.b32.xlu1 %v3388_v38, %s3010_s24  ;;  %788 = vrot.lane.b32.xlu0 %v3397_v39, %s3010_s24 }
 0x117   : > { %v418_v34 = vpop.permute.xlu1 %417  ;;  %v416_v35 = vpop.permute.xlu0 %415 }
 0x118   : > { %487 = vst.msk [vmem:[#allocation2 + $0xd8] sm:$0xff] %vm459_vm1, %v418_v34  ;;  %486 = vst.msk [vmem:[#allocation2 + $0xd0] sm:$0xff] %vm459_vm1, %v416_v35  ;;  %v1882_v34 = vld [vmem:[#allocation6 + $0x8] sm:$0xff] }
 0x119   : > { %794 = vrot.lane.b32.xlu1 %v3400_v40, %s3010_s24  ;;  %792 = vrot.lane.b32.xlu0 %v3403_v41, %s3010_s24 }
 0x11b   : > { %v422_v36 = vpop.permute.xlu1 %421  ;;  %v420_v37 = vpop.permute.xlu0 %419 }
 0x11c   : > { %489 = vst.msk [vmem:[#allocation2 + $0xe8] sm:$0xff] %vm459_vm1, %v422_v36  ;;  %488 = vst.msk [vmem:[#allocation2 + $0xe0] sm:$0xff] %vm459_vm1, %v420_v37  ;;  %v1884_v36 = vld [vmem:[#allocation6 + $0x18] sm:$0xff] }
 0x11d   : > { %798 = vrot.lane.b32.xlu1 %v3420_v44, %s3010_s24  ;;  %796 = vrot.lane.b32.xlu0 %v3423_v45, %s3010_s24 }
 0x11f   : > { %v426_v21 = vpop.permute.xlu1 %425  ;;  %v424_v30 = vpop.permute.xlu0 %423 }
 0x120   : > { %491 = vst.msk [vmem:[#allocation2 + $0xf8] sm:$0xff] %vm459_vm1, %v426_v21  ;;  %490 = vst.msk [vmem:[#allocation2 + $0xf0] sm:$0xff] %vm459_vm1, %v424_v30 }
 0x121   : > { %802 = vrot.lane.b32.xlu1 %v3440_v48, %s3010_s24  ;;  %800 = vrot.lane.b32.xlu0 %v3443_v49, %s3010_s24 }
 0x123   : > { %v559_v12 = vpop.permute.xlu1 %558  ;;  %v557_v16 = vpop.permute.xlu0 %556 }
 0x124   : > { %654 = vst.msk [vmem:[#allocation2 + $0x8] sm:$0xff] %vm652_vm2, %v559_v12  ;;  %653 = vst.msk [vmem:[#allocation2] sm:$0xff] %vm652_vm2, %v557_v16  ;;  %v1885_v12 = vld [vmem:[#allocation6 + $0x20] sm:$0xf] }
 0x125   : > { %806 = vrot.lane.b32.xlu1 %v3460_v52, %s3010_s24  ;;  %804 = vrot.lane.b32.xlu0 %v3463_v53, %s3010_s24 }
 0x127   : > { %v563_v59 = vpop.permute.xlu1 %562  ;;  %v561_v60 = vpop.permute.xlu0 %560 }
 0x128   : > { %656 = vst.msk [vmem:[#allocation2 + $0x18] sm:$0xff] %vm652_vm2, %v563_v59  ;;  %655 = vst.msk [vmem:[#allocation2 + $0x10] sm:$0xff] %vm652_vm2, %v561_v60 }
 0x129   : > { %810 = vrot.lane.b32.xlu1 %v3478_v56, %s3010_s24  ;;  %808 = vrot.lane.b32.xlu0 %v3481_v57, %s3010_s24 }
 0x12b   : > { %v567_v29 = vpop.permute.xlu1 %566  ;;  %v565_v18 = vpop.permute.xlu0 %564 }
 0x12c   : > { %658 = vst.msk [vmem:[#allocation2 + $0x28] sm:$0xff] %vm652_vm2, %v567_v29  ;;  %657 = vst.msk [vmem:[#allocation2 + $0x20] sm:$0xff] %vm652_vm2, %v565_v18 }
 0x12d   : > { %814 = vrot.lane.b32.xlu1 %v2422_v54, %s3010_s24  ;;  %812 = vrot.lane.b32.xlu0 %v2421_v58, %s3010_s24  ;;  %s2919_s24 = sshll.u32 %s3016_s22, 4  ;;  %s2920_s24 = int_to_ptr.vmem [resolvable:$false] %s2919_s24 }
 0x12e   : > { %p2922_p3 = scmp.lt.s32.totalorder %s4319_s28, %s2920_s24 }
 0x12f   : > { %v571_v55 = vpop.permute.xlu1 %570  ;;  %v569_v17 = vpop.permute.xlu0 %568 }
 0x130   : > { %660 = vst.msk [vmem:[#allocation2 + $0x38] sm:$0xff] %vm652_vm2, %v571_v55  ;;  %659 = vst.msk [vmem:[#allocation2 + $0x30] sm:$0xff] %vm652_vm2, %v569_v17 }
 0x131   : > { %947 = vrot.lane.b32.xlu1 %v3253_v2, %s3011_s11  ;;  %945 = vrot.lane.b32.xlu0 %v3246_v0, %s3011_s11 }
 0x133   : > { %v575_v56 = vpop.permute.xlu1 %574  ;;  %v573_v57 = vpop.permute.xlu0 %572 }
 0x134   : > { %662 = vst.msk [vmem:[#allocation2 + $0x48] sm:$0xff] %vm652_vm2, %v575_v56  ;;  %661 = vst.msk [vmem:[#allocation2 + $0x40] sm:$0xff] %vm652_vm2, %v573_v57 }
 0x135   : > { %977 = vrot.lane.b32.xlu1 %v3417_v43, %s3011_s11  ;;  %949 = vrot.lane.b32.xlu0 %v3263_v5, %s3011_s11 }
 0x137   : > { %v579_v28 = vpop.permute.xlu1 %578  ;;  %v577_v31 = vpop.permute.xlu0 %576 }
 0x138   : > { %664 = vst.msk [vmem:[#allocation2 + $0x58] sm:$0xff] %vm652_vm2, %v579_v28  ;;  %663 = vst.msk [vmem:[#allocation2 + $0x50] sm:$0xff] %vm652_vm2, %v577_v31 }
 0x139   : > { %1138 = vrot.lane.b32.xlu1 %v3510_v9, %s3012_s18  ;;  %979 = vrot.lane.b32.xlu0 %v3414_v42, %s3011_s11 }
 0x13b   : > { %v583_v0 = vpop.permute.xlu1 %582  ;;  %v581_v2 = vpop.permute.xlu0 %580 }
 0x13c   : > { %666 = vst.msk [vmem:[#allocation2 + $0x68] sm:$0xff] %vm652_vm2, %v583_v0  ;;  %665 = vst.msk [vmem:[#allocation2 + $0x60] sm:$0xff] %vm652_vm2, %v581_v2  ;;  %v2445_v2 = vld [vmem:[%s3235_s21 + $0x121] sm:$0xff] }
 0x13d   : > { %1140 = vrot.lane.b32.xlu1 %v3507_v8, %s3012_s18  ;;  %1170 = vrot.lane.b32.xlu0 %v3563_v62, %s3012_s18 }
 0x13f   : > { %v587_v43 = vpop.permute.xlu1 %586  ;;  %v585_v32 = vpop.permute.xlu0 %584 }
 0x140   : > { %668 = vst.msk [vmem:[#allocation2 + $0x78] sm:$0xff] %vm652_vm2, %v587_v43  ;;  %667 = vst.msk [vmem:[#allocation2 + $0x70] sm:$0xff] %vm652_vm2, %v585_v32  ;;  %v2524_v32 = vld [vmem:[%s3235_s21 + $0x69] sm:$0xff] }
 0x141   : > { %1334 = vrot.lane.b32.xlu1 %v3308_v20, %s3013_s5  ;;  %1172 = vrot.lane.b32.xlu0 %v3560_v61, %s3012_s18 }
 0x143   : > { %v591_v42 = vpop.permute.xlu1 %590  ;;  %v589_v9 = vpop.permute.xlu0 %588 }
 0x144   : > { %670 = vst.msk [vmem:[#allocation2 + $0x88] sm:$0xff] %vm652_vm2, %v591_v42  ;;  %669 = vst.msk [vmem:[#allocation2 + $0x80] sm:$0xff] %vm652_vm2, %v589_v9 }
 0x145   : > { %1336 = vrot.lane.b32.xlu1 %v3305_v19, %s3013_s5  ;;  %1366 = vrot.lane.b32.xlu0 %v3397_v39, %s3013_s5 }
 0x147   : > { %v595_v8 = vpop.permute.xlu1 %594  ;;  %v593_v62 = vpop.permute.xlu0 %592 }
 0x148   : > { %672 = vst.msk [vmem:[#allocation2 + $0x98] sm:$0xff] %vm652_vm2, %v595_v8  ;;  %671 = vst.msk [vmem:[#allocation2 + $0x90] sm:$0xff] %vm652_vm2, %v593_v62 }
 0x149   : > { %1527 = vrot.lane.b32.xlu1 %v3263_v5, %s3014_s26  ;;  %1368 = vrot.lane.b32.xlu0 %v3388_v38, %s3013_s5  ;;  %v2718_v5 = vpack.c.bf16 %v1882_v34, %v1881_v33  ;;  %v2461_v33 = vld [vmem:[%s3235_s21 + $0x62] sm:$0xff] }
 0x14b   : > { %v599_v20 = vpop.permute.xlu1 %598  ;;  %v597_v61 = vpop.permute.xlu0 %596  ;;  %2719 = vmatprep.subr.bf16.mxu0 %v2718_v5  ;;  %2726 = vmatprep.subr.bf16.mxu1 %v2718_v5 }
 0x14c   : > { %674 = vst.msk [vmem:[#allocation2 + $0xa8] sm:$0xff] %vm652_vm2, %v599_v20  ;;  %673 = vst.msk [vmem:[#allocation2 + $0xa0] sm:$0xff] %vm652_vm2, %v597_v61  ;;  %2721 = vmatpush3.bf16.msra.mxu0 %v2718_v5  ;;  %2729 = vmatpush3.bf16.msra.mxu1 %v2718_v5  ;;  %v4402_v20 = vld [vmem:[#allocation16_spill] sm:$0xff]  ;;  %v4403_v61 = vld [vmem:[#allocation14_spill] sm:$0xff] }
 0x14d   : > { %981 = vrot.lane.b32.xlu1 %v3437_v47, %s3011_s11  ;;  %1559 = vrot.lane.b32.xlu0 %v3437_v47, %s3014_s26  ;;  %v1883_v47 = vld [vmem:[#allocation6 + $0x10] sm:$0xff] }
 0x14e   : > { %v2722_v37 = vpack.c.bf16 %v1884_v36, %v1883_v47  ;;  %v4404_v36 = vld [vmem:[#allocation15_spill] sm:$0xff] }
 0x14f   : > { %v603_v19 = vpop.permute.xlu1 %602  ;;  %v601_v39 = vpop.permute.xlu0 %600 }
 0x150   : > { %676 = vst.msk [vmem:[#allocation2 + $0xb8] sm:$0xff] %vm652_vm2, %v603_v19  ;;  %675 = vst.msk [vmem:[#allocation2 + $0xb0] sm:$0xff] %vm652_vm2, %v601_v39  ;;  %2723 = vmatprep.subr.bf16.mxu0 %v2722_v37  ;;  %2727 = vmatprep.subr.bf16.mxu1 %v2722_v37 }
 0x151   : > { %1561 = vrot.lane.b32.xlu1 %v3434_v46, %s3014_s26  ;;  %1529 = vrot.lane.b32.xlu0 %v3260_v4, %s3014_s26 }
 0x152   : > { %2725 = vmatpush3.bf16.msra.mxu0 %v2722_v37  ;;  %2730 = vmatpush3.bf16.msra.mxu1 %v2722_v37 }
 0x153   : > { %v607_v38 = vpop.permute.xlu1 %606  ;;  %v605_v35 = vpop.permute.xlu0 %604  ;;  %2668 = vmatprep.subr.msk.mxu0 %vm1990_vm3, %v1885_v12  ;;  %2728 = vmatprep.subr.msk.mxu1 %vm1990_vm3, %v1885_v12 }
 0x154   : > { %678 = vst.msk [vmem:[#allocation2 + $0xc8] sm:$0xff] %vm652_vm2, %v607_v38  ;;  %677 = vst.msk [vmem:[#allocation2 + $0xc0] sm:$0xff] %vm652_vm2, %v605_v35  ;;  %v2556_v38 = vld [vmem:[%s3235_s21 + $0x6a] sm:$0xff] }
 0x155   : > { %1752 = vrot.lane.b32.xlu1 %v3573_v1, %s3015_s10  ;;  %1720 = vrot.lane.b32.xlu0 %v3520_v11, %s3015_s10 }
 0x156   : > { %2669 = vmatpush3.msk.msra.mxu0 %vm1990_vm3, %v1885_v12  ;;  %2731 = vmatpush3.msk.msra.mxu1 %vm1990_vm3, %v1885_v12 }
 0x157   : > { %v611_v21 = vpop.permute.xlu1 %610  ;;  %v609_v30 = vpop.permute.xlu0 %608 }
 0x158   : > { %680 = vst.msk [vmem:[#allocation2 + $0xd8] sm:$0xff] %vm652_vm2, %v611_v21  ;;  %679 = vst.msk [vmem:[#allocation2 + $0xd0] sm:$0xff] %vm652_vm2, %v609_v30 }
 0x159   : > { %983 = vrot.lane.b32.xlu1 %v3434_v46, %s3011_s11  ;;  %951 = vrot.lane.b32.xlu0 %v3260_v4, %s3011_s11 }
 0x15b   : > { %v615_v16 = vpop.permute.xlu1 %614  ;;  %v613_v59 = vpop.permute.xlu0 %612 }
 0x15c   : > { %682 = vst.msk [vmem:[#allocation2 + $0xe8] sm:$0xff] %vm652_vm2, %v615_v16  ;;  %681 = vst.msk [vmem:[#allocation2 + $0xe0] sm:$0xff] %vm652_vm2, %v613_v59 }
 0x15d   : > { %1174 = vrot.lane.b32.xlu1 %v3573_v1, %s3012_s18  ;;  %1142 = vrot.lane.b32.xlu0 %v3520_v11, %s3012_s18 }
 0x15f   : > { %v619_v46 = vpop.permute.xlu1 %618  ;;  %v617_v4 = vpop.permute.xlu0 %616 }
 0x160   : > { %684 = vst.msk [vmem:[#allocation2 + $0xf8] sm:$0xff] %vm652_vm2, %v619_v46  ;;  %683 = vst.msk [vmem:[#allocation2 + $0xf0] sm:$0xff] %vm652_vm2, %v617_v4  ;;  %v2541_v46 = vld [vmem:[%s3235_s21 + $0x139] sm:$0xff] }
 0x161   : > { %1754 = vrot.lane.b32.xlu1 %v3570_v63, %s3015_s10  ;;  %1722 = vrot.lane.b32.xlu0 %v3517_v10, %s3015_s10 }
 0x163   : > { %v755_v60 = vpop.permute.xlu1 %754  ;;  %v753_v54 = vpop.permute.xlu0 %752 }
 0x164   : > { %850 = vst.msk [vmem:[#allocation2 + $0x8] sm:$0xff] %vm848_vm4, %v755_v60  ;;  %849 = vst.msk [vmem:[#allocation2] sm:$0xff] %vm848_vm4, %v753_v54  ;;  %v2526_v54 = vld [vmem:[%s3235_s21 + $0x81] sm:$0xff] }
 0x165   : > { %1176 = vrot.lane.b32.xlu1 %v3570_v63, %s3012_s18  ;;  %1144 = vrot.lane.b32.xlu0 %v3517_v10, %s3012_s18 }
 0x167   : > { %v759_v11 = vpop.permute.xlu1 %758  ;;  %v757_v1 = vpop.permute.xlu0 %756 }
 0x168   : > { %852 = vst.msk [vmem:[#allocation2 + $0x18] sm:$0xff] %vm848_vm4, %v759_v11  ;;  %851 = vst.msk [vmem:[#allocation2 + $0x10] sm:$0xff] %vm848_vm4, %v757_v1 }
 0x169   : > { %1370 = vrot.lane.b32.xlu1 %v3403_v41, %s3013_s5  ;;  %1338 = vrot.lane.b32.xlu0 %v3323_v23, %s3013_s5 }
 0x16b   : > { %v763_v58 = vpop.permute.xlu1 %762  ;;  %v761_v29 = vpop.permute.xlu0 %760 }
 0x16c   : > { %854 = vst.msk [vmem:[#allocation2 + $0x28] sm:$0xff] %vm848_vm4, %v763_v58  ;;  %853 = vst.msk [vmem:[#allocation2 + $0x20] sm:$0xff] %vm848_vm4, %v761_v29  ;;  %v2573_v58 = vld [vmem:[%s3235_s21 + $0x13a] sm:$0xff] }
 0x16d   : > { %1372 = vrot.lane.b32.xlu1 %v3400_v40, %s3013_s5  ;;  %1340 = vrot.lane.b32.xlu0 %v3318_v22, %s3013_s5  ;;  %v2557_v29 = vld [vmem:[%s3235_s21 + $0x7a] sm:$0xff] }
 0x16f   : > { %v767_v10 = vpop.permute.xlu1 %766  ;;  %v765_v63 = vpop.permute.xlu0 %764 }
 0x170   : > { %856 = vst.msk [vmem:[#allocation2 + $0x38] sm:$0xff] %vm848_vm4, %v767_v10  ;;  %855 = vst.msk [vmem:[#allocation2 + $0x30] sm:$0xff] %vm848_vm4, %v765_v63 }
 0x171   : > { %1563 = vrot.lane.b32.xlu1 %v3457_v51, %s3014_s26  ;;  %1531 = vrot.lane.b32.xlu0 %v3273_v7, %s3014_s26 }
 0x173   : > { %v771_v23 = vpop.permute.xlu1 %770  ;;  %v769_v41 = vpop.permute.xlu0 %768 }
 0x174   : > { %858 = vst.msk [vmem:[#allocation2 + $0x48] sm:$0xff] %vm848_vm4, %v771_v23  ;;  %857 = vst.msk [vmem:[#allocation2 + $0x40] sm:$0xff] %vm848_vm4, %v769_v41 }
 0x175   : > { %985 = vrot.lane.b32.xlu1 %v3457_v51, %s3011_s11  ;;  %953 = vrot.lane.b32.xlu0 %v3273_v7, %s3011_s11 }
 0x177   : > { %v775_v22 = vpop.permute.xlu1 %774  ;;  %v773_v40 = vpop.permute.xlu0 %772 }
 0x178   : > { %860 = vst.msk [vmem:[#allocation2 + $0x58] sm:$0xff] %vm848_vm4, %v775_v22  ;;  %859 = vst.msk [vmem:[#allocation2 + $0x50] sm:$0xff] %vm848_vm4, %v773_v40 }
 0x179   : > { %1565 = vrot.lane.b32.xlu1 %v3454_v50, %s3014_s26  ;;  %1533 = vrot.lane.b32.xlu0 %v3270_v6, %s3014_s26 }
 0x17b   : > { %v779_v18 = vpop.permute.xlu1 %778  ;;  %v777_v55 = vpop.permute.xlu0 %776 }
 0x17c   : > { %862 = vst.msk [vmem:[#allocation2 + $0x68] sm:$0xff] %vm848_vm4, %v779_v18  ;;  %861 = vst.msk [vmem:[#allocation2 + $0x60] sm:$0xff] %vm848_vm4, %v777_v55 }
 0x17d   : > { %1756 = vrot.lane.b32.xlu1 %v3583_v15, %s3015_s10  ;;  %1724 = vrot.lane.b32.xlu0 %v3530_v14, %s3015_s10 }
 0x17f   : > { %v783_v7 = vpop.permute.xlu1 %782  ;;  %v781_v51 = vpop.permute.xlu0 %780 }
 0x180   : > { %864 = vst.msk [vmem:[#allocation2 + $0x78] sm:$0xff] %vm848_vm4, %v783_v7  ;;  %863 = vst.msk [vmem:[#allocation2 + $0x70] sm:$0xff] %vm848_vm4, %v781_v51  ;;  %v2574_v7 = vld [vmem:[%s3235_s21 + $0x142] sm:$0xff] }
 0x181   : > { %987 = vrot.lane.b32.xlu1 %v3454_v50, %s3011_s11  ;;  %955 = vrot.lane.b32.xlu0 %v3270_v6, %s3011_s11  ;;  %v2558_v51 = vld [vmem:[%s3235_s21 + $0x82] sm:$0xff] }
 0x183   : > { %v787_v17 = vpop.permute.xlu1 %786  ;;  %v785_v56 = vpop.permute.xlu0 %784 }
 0x184   : > { %866 = vst.msk [vmem:[#allocation2 + $0x88] sm:$0xff] %vm848_vm4, %v787_v17  ;;  %865 = vst.msk [vmem:[#allocation2 + $0x80] sm:$0xff] %vm848_vm4, %v785_v56 }
 0x185   : > { %1178 = vrot.lane.b32.xlu1 %v3583_v15, %s3012_s18  ;;  %1146 = vrot.lane.b32.xlu0 %v3530_v14, %s3012_s18 }
 0x187   : > { %v791_v57 = vpop.permute.xlu1 %790  ;;  %v789_v28 = vpop.permute.xlu0 %788 }
 0x188   : > { %868 = vst.msk [vmem:[#allocation2 + $0x98] sm:$0xff] %vm848_vm4, %v791_v57  ;;  %867 = vst.msk [vmem:[#allocation2 + $0x90] sm:$0xff] %vm848_vm4, %v789_v28 }
 0x189   : > { %1758 = vrot.lane.b32.xlu1 %v3580_v3, %s3015_s10  ;;  %1726 = vrot.lane.b32.xlu0 %v3527_v13, %s3015_s10 }
 0x18b   : > { %v795_v6 = vpop.permute.xlu1 %794  ;;  %v793_v50 = vpop.permute.xlu0 %792 }
 0x18c   : > { %870 = vst.msk [vmem:[#allocation2 + $0xa8] sm:$0xff] %vm848_vm4, %v795_v6  ;;  %869 = vst.msk [vmem:[#allocation2 + $0xa0] sm:$0xff] %vm848_vm4, %v793_v50 }
 0x18d   : > { %1180 = vrot.lane.b32.xlu1 %v3580_v3, %s3012_s18  ;;  %1148 = vrot.lane.b32.xlu0 %v3527_v13, %s3012_s18  ;;  %v2523_v13 = vld [vmem:[%s3235_s21 + $0x61] sm:$0xff] }
 0x18f   : > { %v799_v14 = vpop.permute.xlu1 %798  ;;  %v797_v15 = vpop.permute.xlu0 %796 }
 0x190   : > { %872 = vst.msk [vmem:[#allocation2 + $0xb8] sm:$0xff] %vm848_vm4, %v799_v14  ;;  %871 = vst.msk [vmem:[#allocation2 + $0xb0] sm:$0xff] %vm848_vm4, %v797_v15  ;;  %v2495_v14 = vld [vmem:[%s3235_s21 + $0x90] sm:$0xff] }
 0x191   : > { %1374 = vrot.lane.b32.xlu1 %v3423_v45, %s3013_s5  ;;  %1342 = vrot.lane.b32.xlu0 %v3329_v25, %s3013_s5  ;;  %v4401_v25 = vld [vmem:[#allocation13_spill] sm:$0xff] }
 0x193   : > { %v803_v31 = vpop.permute.xlu1 %802  ;;  %v801_v0 = vpop.permute.xlu0 %800 }
 0x194   : > { %874 = vst.msk [vmem:[#allocation2 + $0xc8] sm:$0xff] %vm848_vm4, %v803_v31  ;;  %873 = vst.msk [vmem:[#allocation2 + $0xc0] sm:$0xff] %vm848_vm4, %v801_v0  ;;  %v2496_v0 = vld [vmem:[%s3235_s21 + $0x98] sm:$0xff] }
 0x195   : > { %1376 = vrot.lane.b32.xlu1 %v3420_v44, %s3013_s5  ;;  %1344 = vrot.lane.b32.xlu0 %v3326_v24, %s3013_s5  ;;  %v2540_v24 = vld [vmem:[%s3235_s21 + $0x129] sm:$0xff] }
 0x197   : > { %v807_v3 = vpop.permute.xlu1 %806  ;;  %v805_v45 = vpop.permute.xlu0 %804 }
 0x198   : > { %876 = vst.msk [vmem:[#allocation2 + $0xd8] sm:$0xff] %vm848_vm4, %v807_v3  ;;  %875 = vst.msk [vmem:[#allocation2 + $0xd0] sm:$0xff] %vm848_vm4, %v805_v45  ;;  %v2543_v45 = vld [vmem:[%s3235_s21 + $0x151] sm:$0xff] }
 0x199   : > { %1567 = vrot.lane.b32.xlu1 %v4401_v25, %s3014_s26  ;;  %1535 = vrot.lane.b32.xlu0 %v2523_v13, %s3014_s26  ;;  %v2527_v25 = vld [vmem:[%s3235_s21 + $0x91] sm:$0xff] }
 0x19b   : > { %v811_v43 = vpop.permute.xlu1 %810  ;;  %v809_v44 = vpop.permute.xlu0 %808 }
 0x19c   : > { %878 = vst.msk [vmem:[#allocation2 + $0xe8] sm:$0xff] %vm848_vm4, %v811_v43  ;;  %877 = vst.msk [vmem:[#allocation2 + $0xe0] sm:$0xff] %vm848_vm4, %v809_v44  ;;  %v2544_v44 = vld [vmem:[%s3235_s21 + $0x159] sm:$0xff] }
 0x19d   : > { %989 = vrot.lane.b32.xlu1 %v2445_v2, %s3011_s11  ;;  %957 = vrot.lane.b32.xlu0 %v2523_v13, %s3011_s11 }
 0x19f   : > { %v815_v42 = vpop.permute.xlu1 %814  ;;  %v813_v9 = vpop.permute.xlu0 %812 }
 0x1a0   : > { %880 = vst.msk [vmem:[#allocation2 + $0xf8] sm:$0xff] %vm848_vm4, %v815_v42  ;;  %879 = vst.msk [vmem:[#allocation2 + $0xf0] sm:$0xff] %vm848_vm4, %v813_v9  ;;  %v2575_v9 = vld [vmem:[%s3235_s21 + $0x152] sm:$0xff] }
 0x1a1   : > { %1569 = vrot.lane.b32.xlu1 %v2540_v24, %s3014_s26  ;;  %1537 = vrot.lane.b32.xlu0 %v2524_v32, %s3014_s26 }
 0x1a3   : > { %v948_v8 = vpop.permute.xlu1 %947  ;;  %v946_v62 = vpop.permute.xlu0 %945 }
 0x1a4   : > { %1043 = vst.msk [vmem:[#allocation2 + $0x8] sm:$0xff] %vm1041_vm5, %v948_v8  ;;  %1042 = vst.msk [vmem:[#allocation2] sm:$0xff] %vm1041_vm5, %v946_v62  ;;  %v2559_v8 = vld [vmem:[%s3235_s21 + $0x92] sm:$0xff] }
 0x1a5   : > { %1760 = vrot.lane.b32.xlu1 %v4402_v20, %s3015_s10  ;;  %1728 = vrot.lane.b32.xlu0 %v4403_v61, %s3015_s10 }
 0x1a7   : > { %v978_v19 = vpop.permute.xlu1 %977  ;;  %v950_v39 = vpop.permute.xlu0 %949 }
 0x1a8   : > { %1058 = vst.msk [vmem:[#allocation2 + $0x80] sm:$0xff] %vm1041_vm5, %v978_v19  ;;  %1044 = vst.msk [vmem:[#allocation2 + $0x10] sm:$0xff] %vm1041_vm5, %v950_v39 }
 0x1a9   : > { %991 = vrot.lane.b32.xlu1 %v2540_v24, %s3011_s11  ;;  %959 = vrot.lane.b32.xlu0 %v2524_v32, %s3011_s11  ;;  %v2528_v24 = vld [vmem:[%s3235_s21 + $0x99] sm:$0xff] }
 0x1ab   : > { %v1139_v34 = vpop.permute.xlu1 %1138  ;;  %v980_v5 = vpop.permute.xlu0 %979 }
 0x1ac   : > { %1235 = vst.msk [vmem:[#allocation2] sm:$0xff] %vm1234_vm6, %v1139_v34 }
 0x1ad   : > { %1059 = vst.msk [vmem:[#allocation2 + $0x88] sm:$0xff] %vm1041_vm5, %v980_v5  ;;  %1182 = vrot.lane.b32.xlu1 %v4402_v20, %s3012_s18  ;;  %1150 = vrot.lane.b32.xlu0 %v2461_v33, %s3012_s18 }
 0x1af   : > { %v1141_v35 = vpop.permute.xlu1 %1140  ;;  %v1171_v47 = vpop.permute.xlu0 %1170 }
 0x1b0   : > { %1236 = vst.msk [vmem:[#allocation2 + $0x8] sm:$0xff] %vm1234_vm6, %v1141_v35  ;;  %1251 = vst.msk [vmem:[#allocation2 + $0x80] sm:$0xff] %vm1234_vm6, %v1171_v47  ;;  %v2560_v35 = vld [vmem:[%s3235_s21 + $0x9a] sm:$0xff] }
 0x1b1   : > { %1762 = vrot.lane.b32.xlu1 %v4404_v36, %s3015_s10  ;;  %1730 = vrot.lane.b32.xlu0 %v2556_v38, %s3015_s10 }
 0x1b3   : > { %v1335_v37 = vpop.permute.xlu1 %1334  ;;  %v1173_v21 = vpop.permute.xlu0 %1172 }
 0x1b4   : > { %1431 = vst.msk [vmem:[#allocation2] sm:$0xff] %vm1430_vm7, %v1335_v37 }
 0x1b5   : > { %1252 = vst.msk [vmem:[#allocation2 + $0x88] sm:$0xff] %vm1234_vm6, %v1173_v21  ;;  %1184 = vrot.lane.b32.xlu1 %v4404_v36, %s3012_s18  ;;  %1152 = vrot.lane.b32.xlu0 %v2556_v38, %s3012_s18  ;;  %v2576_v38 = vld [vmem:[%s3235_s21 + $0x15a] sm:$0xff] }
 0x1b7   : > { %v1337_v30 = vpop.permute.xlu1 %1336  ;;  %v1367_v12 = vpop.permute.xlu0 %1366 }
 0x1b8   : > { %1432 = vst.msk [vmem:[#allocation2 + $0x8] sm:$0xff] %vm1430_vm7, %v1337_v30  ;;  %1447 = vst.msk [vmem:[#allocation2 + $0x80] sm:$0xff] %vm1430_vm7, %v1367_v12 }
 0x1b9   : > { %1378 = vrot.lane.b32.xlu1 %v3443_v49, %s3013_s5  ;;  %1346 = vrot.lane.b32.xlu0 %v3341_v27, %s3013_s5  ;;  %v2525_v49 = vld [vmem:[%s3235_s21 + $0x79] sm:$0xff] }
 0x1bb   : > { %v1528_v16 = vpop.permute.xlu1 %1527  ;;  %v1369_v59 = vpop.permute.xlu0 %1368 }
 0x1bc   : > { %1624 = vst.msk [vmem:[#allocation2] sm:$0xff] %vm1623_vm8, %v1528_v16  ;;  %v2513_v16 = vld [vmem:[%s3235_s21 + $0x168] sm:$0xff] }
 0x1bd   : > { %1448 = vst.msk [vmem:[#allocation2 + $0x88] sm:$0xff] %vm1430_vm7, %v1369_v59  ;;  %1380 = vrot.lane.b32.xlu1 %v3440_v48, %s3013_s5  ;;  %1348 = vrot.lane.b32.xlu0 %v3338_v26, %s3013_s5  ;;  %v2542_v26 = vld [vmem:[%s3235_s21 + $0x141] sm:$0xff] }
 0x1be   : > { %v2497_v59 = vld [vmem:[%s3235_s21 + $0xa8] sm:$0xff] }
 0x1bf   : > { %v982_v4 = vpop.permute.xlu1 %981  ;;  %v1560_v60 = vpop.permute.xlu0 %1559 }
 0x1c0   : > { %1060 = vst.msk [vmem:[#allocation2 + $0x90] sm:$0xff] %vm1041_vm5, %v982_v4  ;;  %v2514_v4 = vld [vmem:[%s3235_s21 + $0x170] sm:$0xff] }
 0x1c1   : > { %1640 = vst.msk [vmem:[#allocation2 + $0x80] sm:$0xff] %vm1623_vm8, %v1560_v60  ;;  %1571 = vrot.lane.b32.xlu1 %v2541_v46, %s3014_s26  ;;  %1539 = vrot.lane.b32.xlu0 %v2525_v49, %s3014_s26  ;;  %v2498_v60 = vld [vmem:[%s3235_s21 + $0xb0] sm:$0xff] }
 0x1c3   : > { %v1562_v27 = vpop.permute.xlu1 %1561  ;;  %v1530_v48 = vpop.permute.xlu0 %1529 }
 0x1c4   : > { %1641 = vst.msk [vmem:[#allocation2 + $0x88] sm:$0xff] %vm1623_vm8, %v1562_v27  ;;  %1625 = vst.msk [vmem:[#allocation2 + $0x8] sm:$0xff] %vm1623_vm8, %v1530_v48 }
 0x1c5   : > { %993 = vrot.lane.b32.xlu1 %v2541_v46, %s3011_s11  ;;  %961 = vrot.lane.b32.xlu0 %v2525_v49, %s3011_s11 }
 0x1c7   : > { %v1753_v11 = vpop.permute.xlu1 %1752  ;;  %v1721_v1 = vpop.permute.xlu0 %1720 }
 0x1c8   : > { %1833 = vst.msk [vmem:[#allocation2 + $0x80] sm:$0xff] %vm1816_vm9, %v1753_v11  ;;  %1817 = vst.msk [vmem:[#allocation2] sm:$0xff] %vm1816_vm9, %v1721_v1 }
 0x1c9   : > { %1573 = vrot.lane.b32.xlu1 %v2542_v26, %s3014_s26  ;;  %1541 = vrot.lane.b32.xlu0 %v2526_v54, %s3014_s26 }
 0x1cb   : > { %v984_v10 = vpop.permute.xlu1 %983  ;;  %v952_v63 = vpop.permute.xlu0 %951 }
 0x1cc   : > { %1061 = vst.msk [vmem:[#allocation2 + $0x98] sm:$0xff] %vm1041_vm5, %v984_v10  ;;  %1045 = vst.msk [vmem:[#allocation2 + $0x18] sm:$0xff] %vm1041_vm5, %v952_v63  ;;  %v2546_v10 = vld [vmem:[%s3235_s21 + $0x171] sm:$0xff] }
 0x1cd   : > { %1764 = vrot.lane.b32.xlu1 %v2573_v58, %s3015_s10  ;;  %1732 = vrot.lane.b32.xlu0 %v2557_v29, %s3015_s10  ;;  %v2530_v63 = vld [vmem:[%s3235_s21 + $0xb1] sm:$0xff] }
 0x1cf   : > { %v1175_v23 = vpop.permute.xlu1 %1174  ;;  %v1143_v41 = vpop.permute.xlu0 %1142  ;;  %v1849_v22 = vld [vmem:[#allocation2] sm:$0xff] }
 0x1d0   : > { %v1865_v40 = vld [vmem:[#allocation2 + $0x80] sm:$0xff]  ;;  %1253 = vst.msk [vmem:[#allocation2 + $0x90] sm:$0xff] %vm1234_vm6, %v1175_v23  ;;  %1237 = vst.msk [vmem:[#allocation2 + $0x10] sm:$0xff] %vm1234_vm6, %v1143_v41  ;;  %2670 = vmatprep.mubr.msk.f32.mxu0 %vm1893_vm10, %v1849_v22 }
 0x1d1   : > { %2694 = vmatprep.mubr.msk.f32.mxu1 %vm1893_vm10, %v1865_v40  ;;  %995 = vrot.lane.b32.xlu1 %v2542_v26, %s3011_s11  ;;  %v2545_v26 = vld [vmem:[%s3235_s21 + $0x169] sm:$0xff] }
 0x1d2   : > { %963 = vrot.lane.b32.xlu0 %v2526_v54, %s3011_s11  ;;  %v2529_v54 = vld [vmem:[%s3235_s21 + $0xa9] sm:$0xff] }
 0x1d3   : > { %v1755_v18 = vpop.permute.xlu1 %1754  ;;  %v1723_v55 = vpop.permute.xlu0 %1722  ;;  %v2577_v22 = vld [vmem:[%s3235_s21 + $0x16a] sm:$0xff] }
 0x1d4   : > { %1834 = vst.msk [vmem:[#allocation2 + $0x88] sm:$0xff] %vm1816_vm9, %v1755_v18  ;;  %1818 = vst.msk [vmem:[#allocation2 + $0x8] sm:$0xff] %vm1816_vm9, %v1723_v55  ;;  %v2561_v40 = vld [vmem:[%s3235_s21 + $0xaa] sm:$0xff] }
 0x1d5   : > { %1186 = vrot.lane.b32.xlu1 %v2573_v58, %s3012_s18 }
 0x1d6   : > { %1154 = vrot.lane.b32.xlu0 %v2557_v29, %s3012_s18 }
 0x1d7   : > { %v1177_v17 = vpop.permute.xlu1 %1176  ;;  %v1145_v56 = vpop.permute.xlu0 %1144 }
 0x1d8   : > { %1254 = vst.msk [vmem:[#allocation2 + $0x98] sm:$0xff] %vm1234_vm6, %v1177_v17  ;;  %1238 = vst.msk [vmem:[#allocation2 + $0x18] sm:$0xff] %vm1234_vm6, %v1145_v56 }
 0x1d9   : > { %1766 = vrot.lane.b32.xlu1 %v2574_v7, %s3015_s10 }
 0x1da   : > { %1734 = vrot.lane.b32.xlu0 %v2558_v51, %s3015_s10 }
 0x1db   : > { %v1371_v57 = vpop.permute.xlu1 %1370  ;;  %v1339_v28 = vpop.permute.xlu0 %1338  ;;  %v1850_v6 = vld [vmem:[#allocation2 + $0x8] sm:$0xff] }
 0x1dc   : > { %v1866_v50 = vld [vmem:[#allocation2 + $0x88] sm:$0xff]  ;;  %1449 = vst.msk [vmem:[#allocation2 + $0x90] sm:$0xff] %vm1430_vm7, %v1371_v57  ;;  %1433 = vst.msk [vmem:[#allocation2 + $0x10] sm:$0xff] %vm1430_vm7, %v1339_v28  ;;  %2671 = vmatmul.mubr.msk.f32.vlgmr.msra.gmra.mrb[0].mxu0 %vm1893_vm10, %v1850_v6 }
 0x1dd   : > { %2695 = vmatmul.mubr.msk.f32.vlgmr.msra.gmra.mrb[0].mxu1 %vm1893_vm10, %v1866_v50  ;;  %1188 = vrot.lane.b32.xlu1 %v2574_v7, %s3012_s18  ;;  %v2578_v6 = vld [vmem:[%s3235_s21 + $0x172] sm:$0xff] }
 0x1de   : > { %1156 = vrot.lane.b32.xlu0 %v2558_v51, %s3012_s18  ;;  %v2562_v50 = vld [vmem:[%s3235_s21 + $0xb2] sm:$0xff] }
 0x1df   : > { %v1373_v15 = vpop.permute.xlu1 %1372  ;;  %v1341_v31 = vpop.permute.xlu0 %1340 }
 0x1e0   : > { %1450 = vst.msk [vmem:[#allocation2 + $0x98] sm:$0xff] %vm1430_vm7, %v1373_v15  ;;  %1434 = vst.msk [vmem:[#allocation2 + $0x18] sm:$0xff] %vm1430_vm7, %v1341_v31 }
 0x1e1   : > { %1382 = vrot.lane.b32.xlu1 %v3463_v53, %s3013_s5 }
 0x1e2   : > { %1350 = vrot.lane.b32.xlu0 %v2495_v14, %s3013_s5 }
 0x1e3   : > { %v1564_v13 = vpop.permute.xlu1 %1563  ;;  %v1532_v3 = vpop.permute.xlu0 %1531 }
 0x1e4   : > { %1642 = vst.msk [vmem:[#allocation2 + $0x90] sm:$0xff] %vm1623_vm8, %v1564_v13  ;;  %1626 = vst.msk [vmem:[#allocation2 + $0x10] sm:$0xff] %vm1623_vm8, %v1532_v3 }
 0x1e5   : > { %1384 = vrot.lane.b32.xlu1 %v3460_v52, %s3013_s5 }
 0x1e6   : > { %1352 = vrot.lane.b32.xlu0 %v2496_v0, %s3013_s5 }
 0x1e7   : > { %v986_v2 = vpop.permute.xlu1 %985  ;;  %v954_v53 = vpop.permute.xlu0 %953 }
 0x1e8   : > { %1062 = vst.msk [vmem:[#allocation2 + $0xa0] sm:$0xff] %vm1041_vm5, %v986_v2  ;;  %1046 = vst.msk [vmem:[#allocation2 + $0x20] sm:$0xff] %vm1041_vm5, %v954_v53 }
 0x1e9   : > { %1575 = vrot.lane.b32.xlu1 %v2543_v45, %s3014_s26 }
 0x1ea   : > { %1543 = vrot.lane.b32.xlu0 %v2527_v25, %s3014_s26 }
 0x1eb   : > { %v1566_v43 = vpop.permute.xlu1 %1565  ;;  %v1534_v52 = vpop.permute.xlu0 %1533 }
 0x1ec   : > { %1643 = vst.msk [vmem:[#allocation2 + $0x98] sm:$0xff] %vm1623_vm8, %v1566_v43  ;;  %1627 = vst.msk [vmem:[#allocation2 + $0x18] sm:$0xff] %vm1623_vm8, %v1534_v52  ;;  %v2516_v43 = vld [vmem:[%s3235_s21 + $0x188] sm:$0xff] }
 0x1ed   : > { %997 = vrot.lane.b32.xlu1 %v2543_v45, %s3011_s11  ;;  %v2515_v45 = vld [vmem:[%s3235_s21 + $0x180] sm:$0xff]  ;;  %v2500_v52 = vld [vmem:[%s3235_s21 + $0xc8] sm:$0xff] }
 0x1ee   : > { %965 = vrot.lane.b32.xlu0 %v2527_v25, %s3011_s11  ;;  %v2499_v25 = vld [vmem:[%s3235_s21 + $0xc0] sm:$0xff] }
 0x1ef   : > { %v1757_v32 = vpop.permute.xlu1 %1756  ;;  %v1725_v42 = vpop.permute.xlu0 %1724 }
 0x1f0   : > { %1835 = vst.msk [vmem:[#allocation2 + $0x90] sm:$0xff] %vm1816_vm9, %v1757_v32  ;;  %1819 = vst.msk [vmem:[#allocation2 + $0x10] sm:$0xff] %vm1816_vm9, %v1725_v42  ;;  %v2547_v32 = vld [vmem:[%s3235_s21 + $0x181] sm:$0xff] }
 0x1f1   : > { %1577 = vrot.lane.b32.xlu1 %v2544_v44, %s3014_s26  ;;  %v2531_v42 = vld [vmem:[%s3235_s21 + $0xc1] sm:$0xff] }
 0x1f2   : > { %1545 = vrot.lane.b32.xlu0 %v2528_v24, %s3014_s26 }
 0x1f3   : > { %v988_v62 = vpop.permute.xlu1 %987  ;;  %v956_v20 = vpop.permute.xlu0 %955 }
 0x1f4   : > { %1063 = vst.msk [vmem:[#allocation2 + $0xa8] sm:$0xff] %vm1041_vm5, %v988_v62  ;;  %1047 = vst.msk [vmem:[#allocation2 + $0x28] sm:$0xff] %vm1041_vm5, %v956_v20 }
 0x1f5   : > { %1768 = vrot.lane.b32.xlu1 %v2575_v9, %s3015_s10 }
 0x1f6   : > { %1736 = vrot.lane.b32.xlu0 %v2559_v8, %s3015_s10 }
 0x1f7   : > { %v1179_v61 = vpop.permute.xlu1 %1178  ;;  %v1147_v19 = vpop.permute.xlu0 %1146  ;;  %v1851_v39 = vld [vmem:[#allocation2 + $0x10] sm:$0xff] }
 0x1f8   : > { %v1867_v33 = vld [vmem:[#allocation2 + $0x90] sm:$0xff]  ;;  %1255 = vst.msk [vmem:[#allocation2 + $0xa0] sm:$0xff] %vm1234_vm6, %v1179_v61  ;;  %1239 = vst.msk [vmem:[#allocation2 + $0x20] sm:$0xff] %vm1234_vm6, %v1147_v19  ;;  %2673 = vmatprep.mubr.msk.f32.mxu0 %vm1893_vm10, %v1851_v39 }
 0x1f9   : > { %2697 = vmatprep.mubr.msk.f32.mxu1 %vm1893_vm10, %v1867_v33  ;;  %999 = vrot.lane.b32.xlu1 %v2544_v44, %s3011_s11  ;;  %v2548_v61 = vld [vmem:[%s3235_s21 + $0x189] sm:$0xff] }
 0x1fa   : > { %967 = vrot.lane.b32.xlu0 %v2528_v24, %s3011_s11  ;;  %v2532_v19 = vld [vmem:[%s3235_s21 + $0xc9] sm:$0xff] }
 0x1fb   : > { %v1759_v34 = vpop.permute.xlu1 %1758  ;;  %v1727_v5 = vpop.permute.xlu0 %1726 }
 0x1fc   : > { %1836 = vst.msk [vmem:[#allocation2 + $0x98] sm:$0xff] %vm1816_vm9, %v1759_v34  ;;  %1820 = vst.msk [vmem:[#allocation2 + $0x18] sm:$0xff] %vm1816_vm9, %v1727_v5  ;;  %v2579_v34 = vld [vmem:[%s3235_s21 + $0x182] sm:$0xff] }
 0x1fd   : > { %1190 = vrot.lane.b32.xlu1 %v2575_v9, %s3012_s18  ;;  %v2563_v5 = vld [vmem:[%s3235_s21 + $0xc2] sm:$0xff] }
 0x1fe   : > { %1158 = vrot.lane.b32.xlu0 %v2559_v8, %s3012_s18 }
 0x1ff   : > { %v1181_v47 = vpop.permute.xlu1 %1180  ;;  %v1149_v36 = vpop.permute.xlu0 %1148 }
 0x200   : > { %1256 = vst.msk [vmem:[#allocation2 + $0xa8] sm:$0xff] %vm1234_vm6, %v1181_v47  ;;  %1240 = vst.msk [vmem:[#allocation2 + $0x28] sm:$0xff] %vm1234_vm6, %v1149_v36 }
 0x201   : > { %1770 = vrot.lane.b32.xlu1 %v2576_v38, %s3015_s10 }
 0x202   : > { %1738 = vrot.lane.b32.xlu0 %v2560_v35, %s3015_s10 }
 0x203   : > { %v1375_v37 = vpop.permute.xlu1 %1374  ;;  %v1343_v21 = vpop.permute.xlu0 %1342  ;;  %v1852_v30 = vld [vmem:[#allocation2 + $0x18] sm:$0xff] }
 0x204   : > { %v1868_v12 = vld [vmem:[#allocation2 + $0x98] sm:$0xff]  ;;  %1451 = vst.msk [vmem:[#allocation2 + $0xa0] sm:$0xff] %vm1430_vm7, %v1375_v37  ;;  %1435 = vst.msk [vmem:[#allocation2 + $0x20] sm:$0xff] %vm1430_vm7, %v1343_v21  ;;  %2674 = vmatmul.mubr.msk.f32.gmra.mrb[2].mxu0 %vm1893_vm10, %v1852_v30 }
 0x205   : > { %2698 = vmatmul.mubr.msk.f32.gmra.mrb[2].mxu1 %vm1893_vm10, %v1868_v12  ;;  %1192 = vrot.lane.b32.xlu1 %v2576_v38, %s3012_s18 }
 0x206   : > { %1160 = vrot.lane.b32.xlu0 %v2560_v35, %s3012_s18 }
 0x207   : > { %v1377_v46 = vpop.permute.xlu1 %1376  ;;  %v1345_v49 = vpop.permute.xlu0 %1344 }
 0x208   : > { %1452 = vst.msk [vmem:[#allocation2 + $0xa8] sm:$0xff] %vm1430_vm7, %v1377_v46  ;;  %1436 = vst.msk [vmem:[#allocation2 + $0x28] sm:$0xff] %vm1430_vm7, %v1345_v49 }
 0x209   : > { %1386 = vrot.lane.b32.xlu1 %v2513_v16, %s3013_s5  ;;  %v2580_v16 = vld [vmem:[%s3235_s21 + $0x18a] sm:$0xff] }
 0x20a   : > { %1354 = vrot.lane.b32.xlu0 %v2497_v59, %s3013_s5  ;;  %v2564_v59 = vld [vmem:[%s3235_s21 + $0xca] sm:$0xff] }
 0x20b   : > { %v1568_v27 = vpop.permute.xlu1 %1567  ;;  %v1536_v48 = vpop.permute.xlu0 %1535 }
 0x20c   : > { %1644 = vst.msk [vmem:[#allocation2 + $0xa0] sm:$0xff] %vm1623_vm8, %v1568_v27  ;;  %1628 = vst.msk [vmem:[#allocation2 + $0x20] sm:$0xff] %vm1623_vm8, %v1536_v48 }
 0x20d   : > { %1388 = vrot.lane.b32.xlu1 %v2514_v4, %s3013_s5 }
 0x20e   : > { %1356 = vrot.lane.b32.xlu0 %v2498_v60, %s3013_s5 }
 0x20f   : > { %v990_v11 = vpop.permute.xlu1 %989  ;;  %v958_v1 = vpop.permute.xlu0 %957 }
 0x210   : > { %1064 = vst.msk [vmem:[#allocation2 + $0xb0] sm:$0xff] %vm1041_vm5, %v990_v11  ;;  %1048 = vst.msk [vmem:[#allocation2 + $0x30] sm:$0xff] %vm1041_vm5, %v958_v1 }
 0x211   : > { %1579 = vrot.lane.b32.xlu1 %v2545_v26, %s3014_s26 }
 0x212   : > { %1547 = vrot.lane.b32.xlu0 %v2529_v54, %s3014_s26 }
 0x213   : > { %v1570_v58 = vpop.permute.xlu1 %1569  ;;  %v1538_v29 = vpop.permute.xlu0 %1537 }
 0x214   : > { %1645 = vst.msk [vmem:[#allocation2 + $0xa8] sm:$0xff] %vm1623_vm8, %v1570_v58  ;;  %1629 = vst.msk [vmem:[#allocation2 + $0x28] sm:$0xff] %vm1623_vm8, %v1538_v29  ;;  %v2518_v58 = vld [vmem:[%s3235_s21 + $0x1a0] sm:$0xff] }
 0x215   : > { %1001 = vrot.lane.b32.xlu1 %v2545_v26, %s3011_s11  ;;  %v2517_v26 = vld [vmem:[%s3235_s21 + $0x198] sm:$0xff]  ;;  %v2502_v29 = vld [vmem:[%s3235_s21 + $0xe0] sm:$0xff] }
 0x216   : > { %969 = vrot.lane.b32.xlu0 %v2529_v54, %s3011_s11  ;;  %v2501_v54 = vld [vmem:[%s3235_s21 + $0xd8] sm:$0xff] }
 0x217   : > { %v1761_v23 = vpop.permute.xlu1 %1760  ;;  %v1729_v41 = vpop.permute.xlu0 %1728 }
 0x218   : > { %1837 = vst.msk [vmem:[#allocation2 + $0xa0] sm:$0xff] %vm1816_vm9, %v1761_v23  ;;  %1821 = vst.msk [vmem:[#allocation2 + $0x20] sm:$0xff] %vm1816_vm9, %v1729_v41  ;;  %v2549_v23 = vld [vmem:[%s3235_s21 + $0x199] sm:$0xff] }
 0x219   : > { %1581 = vrot.lane.b32.xlu1 %v2546_v10, %s3014_s26  ;;  %v2533_v41 = vld [vmem:[%s3235_s21 + $0xd9] sm:$0xff] }
 0x21a   : > { %1549 = vrot.lane.b32.xlu0 %v2530_v63, %s3014_s26 }
 0x21b   : > { %v992_v18 = vpop.permute.xlu1 %991  ;;  %v960_v55 = vpop.permute.xlu0 %959 }
 0x21c   : > { %1065 = vst.msk [vmem:[#allocation2 + $0xb8] sm:$0xff] %vm1041_vm5, %v992_v18  ;;  %1049 = vst.msk [vmem:[#allocation2 + $0x38] sm:$0xff] %vm1041_vm5, %v960_v55  ;;  %v2550_v18 = vld [vmem:[%s3235_s21 + $0x1a1] sm:$0xff] }
 0x21d   : > { %1772 = vrot.lane.b32.xlu1 %v2577_v22, %s3015_s10  ;;  %v2534_v55 = vld [vmem:[%s3235_s21 + $0xe1] sm:$0xff] }
 0x21e   : > { %1740 = vrot.lane.b32.xlu0 %v2561_v40, %s3015_s10 }
 0x21f   : > { %v1183_v7 = vpop.permute.xlu1 %1182  ;;  %v1151_v51 = vpop.permute.xlu0 %1150  ;;  %v1853_v17 = vld [vmem:[#allocation2 + $0x20] sm:$0xff] }
 0x220   : > { %v1869_v56 = vld [vmem:[#allocation2 + $0xa0] sm:$0xff]  ;;  %1257 = vst.msk [vmem:[#allocation2 + $0xb0] sm:$0xff] %vm1234_vm6, %v1183_v7  ;;  %1241 = vst.msk [vmem:[#allocation2 + $0x30] sm:$0xff] %vm1234_vm6, %v1151_v51  ;;  %2676 = vmatprep.mubr.msk.f32.mxu0 %vm1893_vm10, %v1853_v17 }
 0x221   : > { %2700 = vmatprep.mubr.msk.f32.mxu1 %vm1893_vm10, %v1869_v56  ;;  %1003 = vrot.lane.b32.xlu1 %v2546_v10, %s3011_s11  ;;  %v2581_v17 = vld [vmem:[%s3235_s21 + $0x19a] sm:$0xff] }
 0x222   : > { %971 = vrot.lane.b32.xlu0 %v2530_v63, %s3011_s11  ;;  %v2565_v56 = vld [vmem:[%s3235_s21 + $0xda] sm:$0xff] }
 0x223   : > { %v1763_v57 = vpop.permute.xlu1 %1762  ;;  %v1731_v28 = vpop.permute.xlu0 %1730 }
 0x224   : > { %1838 = vst.msk [vmem:[#allocation2 + $0xa8] sm:$0xff] %vm1816_vm9, %v1763_v57  ;;  %1822 = vst.msk [vmem:[#allocation2 + $0x28] sm:$0xff] %vm1816_vm9, %v1731_v28 }
 0x225   : > { %1194 = vrot.lane.b32.xlu1 %v2577_v22, %s3012_s18 }
 0x226   : > { %1162 = vrot.lane.b32.xlu0 %v2561_v40, %s3012_s18 }
 0x227   : > { %v1185_v14 = vpop.permute.xlu1 %1184  ;;  %v1153_v15 = vpop.permute.xlu0 %1152 }
 0x228   : > { %1258 = vst.msk [vmem:[#allocation2 + $0xb8] sm:$0xff] %vm1234_vm6, %v1185_v14  ;;  %1242 = vst.msk [vmem:[#allocation2 + $0x38] sm:$0xff] %vm1234_vm6, %v1153_v15 }
 0x229   : > { %1774 = vrot.lane.b32.xlu1 %v2578_v6, %s3015_s10 }
 0x22a   : > { %1742 = vrot.lane.b32.xlu0 %v2562_v50, %s3015_s10 }
 0x22b   : > { %v1379_v31 = vpop.permute.xlu1 %1378  ;;  %v1347_v0 = vpop.permute.xlu0 %1346  ;;  %v1854_v13 = vld [vmem:[#allocation2 + $0x28] sm:$0xff] }
 0x22c   : > { %v1870_v3 = vld [vmem:[#allocation2 + $0xa8] sm:$0xff]  ;;  %1453 = vst.msk [vmem:[#allocation2 + $0xb0] sm:$0xff] %vm1430_vm7, %v1379_v31  ;;  %1437 = vst.msk [vmem:[#allocation2 + $0x30] sm:$0xff] %vm1430_vm7, %v1347_v0  ;;  %2677 = vmatmul.mubr.msk.f32.gmra.mrb[4].mxu0 %vm1893_vm10, %v1854_v13 }
 0x22d   : > { %2701 = vmatmul.mubr.msk.f32.gmra.mrb[4].mxu1 %vm1893_vm10, %v1870_v3  ;;  %1196 = vrot.lane.b32.xlu1 %v2578_v6, %s3012_s18  ;;  %v2582_v6 = vld [vmem:[%s3235_s21 + $0x1a2] sm:$0xff] }
 0x22e   : > { %1164 = vrot.lane.b32.xlu0 %v2562_v50, %s3012_s18  ;;  %v2566_v50 = vld [vmem:[%s3235_s21 + $0xe2] sm:$0xff]  ;;  %s2915_s21 = scalar_lea.vmem %s4319_s28, 4096 }
 0x22f   : > { %v1381_v2 = vpop.permute.xlu1 %1380  ;;  %v1349_v53 = vpop.permute.xlu0 %1348  ;;  %p2916_p8 = scmp.ne.s32.totalorder %s4319_s28, %s2915_s21 }
 0x230   : > { %1454 = vst.msk [vmem:[#allocation2 + $0xb8] sm:$0xff] %vm1430_vm7, %v1381_v2  ;;  %1438 = vst.msk [vmem:[#allocation2 + $0x38] sm:$0xff] %vm1430_vm7, %v1349_v53 }
 0x231   : > { %1390 = vrot.lane.b32.xlu1 %v2515_v45, %s3013_s5  ;;  %p2917_p1 = pnand %p2916_p8, %p4405_p12 }
 0x232   : > { %1358 = vrot.lane.b32.xlu0 %v2499_v25, %s3013_s5 }
 0x233   : > { %v1572_v44 = vpop.permute.xlu1 %1571  ;;  %v1540_v24 = vpop.permute.xlu0 %1539  ;;  %p2918_p10 = pneg %p2917_p1 }
 0x234   : > { %1646 = vst.msk [vmem:[#allocation2 + $0xb0] sm:$0xff] %vm1623_vm8, %v1572_v44  ;;  %1630 = vst.msk [vmem:[#allocation2 + $0x30] sm:$0xff] %vm1623_vm8, %v1540_v24 }
 0x235   : > { %1392 = vrot.lane.b32.xlu1 %v2516_v43, %s3013_s5 }
 0x236   : > { %1360 = vrot.lane.b32.xlu0 %v2500_v52, %s3013_s5 }
 0x237   : > { %v994_v9 = vpop.permute.xlu1 %993  ;;  %v962_v8 = vpop.permute.xlu0 %961 }
 0x238   : > { %1066 = vst.msk [vmem:[#allocation2 + $0xc0] sm:$0xff] %vm1041_vm5, %v994_v9  ;;  %1050 = vst.msk [vmem:[#allocation2 + $0x40] sm:$0xff] %vm1041_vm5, %v962_v8 }
 0x239   : > { %1583 = vrot.lane.b32.xlu1 %v2547_v32, %s3014_s26 }
 0x23a   : > { %1551 = vrot.lane.b32.xlu0 %v2531_v42, %s3014_s26 }
 0x23b   : > { %v1574_v62 = vpop.permute.xlu1 %1573  ;;  %v1542_v20 = vpop.permute.xlu0 %1541 }
 0x23c   : > { %1647 = vst.msk [vmem:[#allocation2 + $0xb8] sm:$0xff] %vm1623_vm8, %v1574_v62  ;;  %1631 = vst.msk [vmem:[#allocation2 + $0x38] sm:$0xff] %vm1623_vm8, %v1542_v20 }
 0x23d   : > { %1005 = vrot.lane.b32.xlu1 %v2547_v32, %s3011_s11 }
 0x23e   : > { %973 = vrot.lane.b32.xlu0 %v2531_v42, %s3011_s11 }
 0x23f   : > { %v1765_v39 = vpop.permute.xlu1 %1764  ;;  %v1733_v33 = vpop.permute.xlu0 %1732 }
 0x240   : > { %1839 = vst.msk [vmem:[#allocation2 + $0xb0] sm:$0xff] %vm1816_vm9, %v1765_v39  ;;  %1823 = vst.msk [vmem:[#allocation2 + $0x30] sm:$0xff] %vm1816_vm9, %v1733_v33 }
 0x241   : > { %1585 = vrot.lane.b32.xlu1 %v2548_v61, %s3014_s26 }
 0x242   : > { %1553 = vrot.lane.b32.xlu0 %v2532_v19, %s3014_s26 }
 0x243   : > { %v996_v38 = vpop.permute.xlu1 %995 }
 0x244   : > { %v964_v35 = vpop.permute.xlu0 %963  ;;  %1067 = vst.msk [vmem:[#allocation2 + $0xc8] sm:$0xff] %vm1041_vm5, %v996_v38 }
 0x245   : > { %1051 = vst.msk [vmem:[#allocation2 + $0x48] sm:$0xff] %vm1041_vm5, %v964_v35  ;;  %1776 = vrot.lane.b32.xlu1 %v2579_v34, %s3015_s10 }
 0x246   : > { %1744 = vrot.lane.b32.xlu0 %v2563_v5, %s3015_s10 }
 0x247   : > { %v1187_v47 = vpop.permute.xlu1 %1186  ;;  %v1855_v37 = vld [vmem:[#allocation2 + $0x30] sm:$0xff] }
 0x248   : > { %v1155_v36 = vpop.permute.xlu0 %1154  ;;  %v1871_v21 = vld [vmem:[#allocation2 + $0xb0] sm:$0xff]  ;;  %1259 = vst.msk [vmem:[#allocation2 + $0xc0] sm:$0xff] %vm1234_vm6, %v1187_v47  ;;  %2679 = vmatprep.mubr.msk.f32.mxu0 %vm1893_vm10, %v1855_v37 }
 0x249   : > { %1243 = vst.msk [vmem:[#allocation2 + $0x40] sm:$0xff] %vm1234_vm6, %v1155_v36  ;;  %2703 = vmatprep.mubr.msk.f32.mxu1 %vm1893_vm10, %v1871_v21  ;;  %1007 = vrot.lane.b32.xlu1 %v2548_v61, %s3011_s11 }
 0x24a   : > { %975 = vrot.lane.b32.xlu0 %v2532_v19, %s3011_s11  ;;  %s2921_s11 = scalar_lea.vmem %s2920_s24, 8192 }
 0x24b   : > { %v1767_v30 = vpop.permute.xlu1 %1766  ;;  %p2923_p5 = scmp.lt.s32.totalorder %s2921_s11, %s2915_s21 }
 0x24c   : > { %v1735_v12 = vpop.permute.xlu0 %1734  ;;  %1840 = vst.msk [vmem:[#allocation2 + $0xb8] sm:$0xff] %vm1816_vm9, %v1767_v30 }
 0x24d   : > { %1824 = vst.msk [vmem:[#allocation2 + $0x38] sm:$0xff] %vm1816_vm9, %v1735_v12  ;;  %1198 = vrot.lane.b32.xlu1 %v2579_v34, %s3012_s18  ;;  %p2924_p9 = por %p2923_p5, %p2922_p3 }
 0x24e   : > { %1166 = vrot.lane.b32.xlu0 %v2563_v5, %s3012_s18 }
 0x24f   : > { %v1189_v46 = vpop.permute.xlu1 %1188  ;;  %p2925_p2 = pnand %p2924_p9, %p2918_p10 }
 0x250   : > { %v1157_v49 = vpop.permute.xlu0 %1156  ;;  %1260 = vst.msk [vmem:[#allocation2 + $0xc8] sm:$0xff] %vm1234_vm6, %v1189_v46 }
 0x251   : > { %1244 = vst.msk [vmem:[#allocation2 + $0x48] sm:$0xff] %vm1234_vm6, %v1157_v49  ;;  %1778 = vrot.lane.b32.xlu1 %v2580_v16, %s3015_s10 }
 0x252   : > { %1746 = vrot.lane.b32.xlu0 %v2564_v59, %s3015_s10 }
 0x253   : > { %v1383_v4 = vpop.permute.xlu1 %1382  ;;  %v1872_v48 = vld [vmem:[#allocation2 + $0xb8] sm:$0xff] }
 0x254   : > { %v1351_v60 = vpop.permute.xlu0 %1350  ;;  %v1856_v27 = vld [vmem:[#allocation2 + $0x38] sm:$0xff]  ;;  %1455 = vst.msk [vmem:[#allocation2 + $0xc0] sm:$0xff] %vm1430_vm7, %v1383_v4  ;;  %2704 = vmatmul.mubr.msk.f32.gmra.mrb[6].mxu1 %vm1893_vm10, %v1872_v48 }
 0x255   : > { %1439 = vst.msk [vmem:[#allocation2 + $0x40] sm:$0xff] %vm1430_vm7, %v1351_v60  ;;  %2680 = vmatmul.mubr.msk.f32.gmra.mrb[6].mxu0 %vm1893_vm10, %v1856_v27  ;;  %1200 = vrot.lane.b32.xlu1 %v2580_v16, %s3012_s18 }
 0x256   : > { %1168 = vrot.lane.b32.xlu0 %v2564_v59, %s3012_s18 }
 0x257   : > { %v1385_v11 = vpop.permute.xlu1 %1384 }
 0x258   : > { %v1353_v1 = vpop.permute.xlu0 %1352  ;;  %1456 = vst.msk [vmem:[#allocation2 + $0xc8] sm:$0xff] %vm1430_vm7, %v1385_v11 }
 0x259   : > { %1440 = vst.msk [vmem:[#allocation2 + $0x48] sm:$0xff] %vm1430_vm7, %v1353_v1  ;;  %1394 = vrot.lane.b32.xlu1 %v2517_v26, %s3013_s5  ;;  %v4214_v26 = vld [vmem:[#allocation8] ss:$0 sm:$0xff] }
 0x25a   : > { %1362 = vrot.lane.b32.xlu0 %v2501_v54, %s3013_s5 }
 0x25b   : > { %v1576_v10 = vpop.permute.xlu1 %1575 }
 0x25c   : > { %v1544_v63 = vpop.permute.xlu0 %1543  ;;  %1648 = vst.msk [vmem:[#allocation2 + $0xc0] sm:$0xff] %vm1623_vm8, %v1576_v10 }
 0x25d   : > { %1632 = vst.msk [vmem:[#allocation2 + $0x40] sm:$0xff] %vm1623_vm8, %v1544_v63  ;;  %1396 = vrot.lane.b32.xlu1 %v2518_v58, %s3013_s5 }
 0x25e   : > { %1364 = vrot.lane.b32.xlu0 %v2502_v29, %s3013_s5 }
 0x25f   : > { %v998_v22 = vpop.permute.xlu1 %997 }
 0x260   : > { %v966_v40 = vpop.permute.xlu0 %965  ;;  %1068 = vst.msk [vmem:[#allocation2 + $0xd0] sm:$0xff] %vm1041_vm5, %v998_v22 }
 0x261   : > { %1052 = vst.msk [vmem:[#allocation2 + $0x50] sm:$0xff] %vm1041_vm5, %v966_v40  ;;  %1587 = vrot.lane.b32.xlu1 %v2549_v23, %s3014_s26 }
 0x262   : > { %1555 = vrot.lane.b32.xlu0 %v2533_v41, %s3014_s26 }
 0x263   : > { %v1578_v7 = vpop.permute.xlu1 %1577 }
 0x264   : > { %v1546_v51 = vpop.permute.xlu0 %1545  ;;  %1649 = vst.msk [vmem:[#allocation2 + $0xc8] sm:$0xff] %vm1623_vm8, %v1578_v7 }
 0x265   : > { %1633 = vst.msk [vmem:[#allocation2 + $0x48] sm:$0xff] %vm1623_vm8, %v1546_v51  ;;  %1589 = vrot.lane.b32.xlu1 %v2550_v18, %s3014_s26 }
 0x266   : > { %1557 = vrot.lane.b32.xlu0 %v2534_v55, %s3014_s26 }
 0x267   : > { %v1769_v57 = vpop.permute.xlu1 %1768 }
 0x268   : > { %v1737_v28 = vpop.permute.xlu0 %1736  ;;  %1841 = vst.msk [vmem:[#allocation2 + $0xc0] sm:$0xff] %vm1816_vm9, %v1769_v57 }
 0x269   : > { %1825 = vst.msk [vmem:[#allocation2 + $0x40] sm:$0xff] %vm1816_vm9, %v1737_v28  ;;  %1780 = vrot.lane.b32.xlu1 %v2581_v17, %s3015_s10 }
 0x26a   : > { %1748 = vrot.lane.b32.xlu0 %v2565_v56, %s3015_s10 }
 0x26b   : > { %v1000_v14 = vpop.permute.xlu1 %999 }
 0x26c   : > { %v968_v15 = vpop.permute.xlu0 %967  ;;  %1069 = vst.msk [vmem:[#allocation2 + $0xd8] sm:$0xff] %vm1041_vm5, %v1000_v14 }
 0x26d   : > { %1053 = vst.msk [vmem:[#allocation2 + $0x58] sm:$0xff] %vm1041_vm5, %v968_v15  ;;  %1782 = vrot.lane.b32.xlu1 %v2582_v6, %s3015_s10 }
 0x26e   : > { %1750 = vrot.lane.b32.xlu0 %v2566_v50, %s3015_s10 }
 0x26f   : > { %v1191_v31 = vpop.permute.xlu1 %1190  ;;  %v1873_v3 = vld [vmem:[#allocation2 + $0xc0] sm:$0xff] }
 0x270   : > { %v1159_v0 = vpop.permute.xlu0 %1158  ;;  %v1857_v13 = vld [vmem:[#allocation2 + $0x40] sm:$0xff]  ;;  %1261 = vst.msk [vmem:[#allocation2 + $0xd0] sm:$0xff] %vm1234_vm6, %v1191_v31  ;;  %2706 = vmatprep.mubr.msk.f32.mxu1 %vm1893_vm10, %v1873_v3 }
 0x271   : > { %1245 = vst.msk [vmem:[#allocation2 + $0x50] sm:$0xff] %vm1234_vm6, %v1159_v0  ;;  %2682 = vmatprep.mubr.msk.f32.mxu0 %vm1893_vm10, %v1857_v13 }
 0x273   : > { %v1771_v45 = vpop.permute.xlu1 %1770 }
 0x274   : > { %v1739_v25 = vpop.permute.xlu0 %1738  ;;  %1842 = vst.msk [vmem:[#allocation2 + $0xc8] sm:$0xff] %vm1816_vm9, %v1771_v45 }
 0x275   : > { %1826 = vst.msk [vmem:[#allocation2 + $0x48] sm:$0xff] %vm1816_vm9, %v1739_v25 }
 0x277   : > { %v1193_v2 = vpop.permute.xlu1 %1192 }
 0x278   : > { %v1161_v53 = vpop.permute.xlu0 %1160  ;;  %1262 = vst.msk [vmem:[#allocation2 + $0xd8] sm:$0xff] %vm1234_vm6, %v1193_v2 }
 0x279   : > { %1246 = vst.msk [vmem:[#allocation2 + $0x58] sm:$0xff] %vm1234_vm6, %v1161_v53 }
 0x27b   : > { %v1387_v43 = vpop.permute.xlu1 %1386  ;;  %v1874_v24 = vld [vmem:[#allocation2 + $0xc8] sm:$0xff] }
 0x27c   : > { %v1355_v52 = vpop.permute.xlu0 %1354  ;;  %v1858_v44 = vld [vmem:[#allocation2 + $0x48] sm:$0xff]  ;;  %1457 = vst.msk [vmem:[#allocation2 + $0xd0] sm:$0xff] %vm1430_vm7, %v1387_v43  ;;  %2707 = vmatmul.mubr.msk.f32.gmra.mrb[8].mxu1 %vm1893_vm10, %v1874_v24 }
 0x27d   : > { %1441 = vst.msk [vmem:[#allocation2 + $0x50] sm:$0xff] %vm1430_vm7, %v1355_v52  ;;  %2683 = vmatmul.mubr.msk.f32.gmra.mrb[8].mxu0 %vm1893_vm10, %v1858_v44 }
 0x27f   : > { %v1389_v32 = vpop.permute.xlu1 %1388 }
 0x280   : > { %v1357_v42 = vpop.permute.xlu0 %1356  ;;  %1458 = vst.msk [vmem:[#allocation2 + $0xd8] sm:$0xff] %vm1430_vm7, %v1389_v32 }
 0x281   : > { %1442 = vst.msk [vmem:[#allocation2 + $0x58] sm:$0xff] %vm1430_vm7, %v1357_v42 }
 0x283   : > { %v1580_v9 = vpop.permute.xlu1 %1579 }
 0x284   : > { %v1548_v8 = vpop.permute.xlu0 %1547  ;;  %1650 = vst.msk [vmem:[#allocation2 + $0xd0] sm:$0xff] %vm1623_vm8, %v1580_v9 }
 0x285   : > { %1634 = vst.msk [vmem:[#allocation2 + $0x50] sm:$0xff] %vm1623_vm8, %v1548_v8 }
 0x287   : > { %v1002_v62 = vpop.permute.xlu1 %1001 }
 0x288   : > { %v970_v20 = vpop.permute.xlu0 %969  ;;  %1070 = vst.msk [vmem:[#allocation2 + $0xe0] sm:$0xff] %vm1041_vm5, %v1002_v62 }
 0x289   : > { %1054 = vst.msk [vmem:[#allocation2 + $0x60] sm:$0xff] %vm1041_vm5, %v970_v20 }
 0x28b   : > { %v1582_v61 = vpop.permute.xlu1 %1581 }
 0x28c   : > { %v1550_v19 = vpop.permute.xlu0 %1549  ;;  %1651 = vst.msk [vmem:[#allocation2 + $0xd8] sm:$0xff] %vm1623_vm8, %v1582_v61 }
 0x28d   : > { %1635 = vst.msk [vmem:[#allocation2 + $0x58] sm:$0xff] %vm1623_vm8, %v1550_v19 }
 0x28f   : > { %v1773_v39 = vpop.permute.xlu1 %1772 }
 0x290   : > { %v1741_v33 = vpop.permute.xlu0 %1740  ;;  %1843 = vst.msk [vmem:[#allocation2 + $0xd0] sm:$0xff] %vm1816_vm9, %v1773_v39 }
 0x291   : > { %1827 = vst.msk [vmem:[#allocation2 + $0x50] sm:$0xff] %vm1816_vm9, %v1741_v33 }
 0x293   : > { %v1004_v34 = vpop.permute.xlu1 %1003 }
 0x294   : > { %v972_v5 = vpop.permute.xlu0 %971  ;;  %1071 = vst.msk [vmem:[#allocation2 + $0xe8] sm:$0xff] %vm1041_vm5, %v1004_v34 }
 0x295   : > { %1055 = vst.msk [vmem:[#allocation2 + $0x68] sm:$0xff] %vm1041_vm5, %v972_v5 }
 0x297   : > { %v1195_v38 = vpop.permute.xlu1 %1194  ;;  %v1875_v36 = vld [vmem:[#allocation2 + $0xd0] sm:$0xff] }
 0x298   : > { %v1163_v35 = vpop.permute.xlu0 %1162  ;;  %v1859_v47 = vld [vmem:[#allocation2 + $0x50] sm:$0xff]  ;;  %1263 = vst.msk [vmem:[#allocation2 + $0xe0] sm:$0xff] %vm1234_vm6, %v1195_v38  ;;  %2709 = vmatprep.mubr.msk.f32.mxu1 %vm1893_vm10, %v1875_v36 }
 0x299   : > { %1247 = vst.msk [vmem:[#allocation2 + $0x60] sm:$0xff] %vm1234_vm6, %v1163_v35  ;;  %2685 = vmatprep.mubr.msk.f32.mxu0 %vm1893_vm10, %v1859_v47 }
 0x29b   : > { %v1775_v37 = vpop.permute.xlu1 %1774 }
 0x29c   : > { %v1743_v21 = vpop.permute.xlu0 %1742  ;;  %1844 = vst.msk [vmem:[#allocation2 + $0xd8] sm:$0xff] %vm1816_vm9, %v1775_v37 }
 0x29d   : > { %1828 = vst.msk [vmem:[#allocation2 + $0x58] sm:$0xff] %vm1816_vm9, %v1743_v21 }
 0x29f   : > { %v1197_v30 = vpop.permute.xlu1 %1196 }
 0x2a0   : > { %v1165_v12 = vpop.permute.xlu0 %1164  ;;  %1264 = vst.msk [vmem:[#allocation2 + $0xe8] sm:$0xff] %vm1234_vm6, %v1197_v30 }
 0x2a1   : > { %1248 = vst.msk [vmem:[#allocation2 + $0x68] sm:$0xff] %vm1234_vm6, %v1165_v12 }
 0x2a3   : > { %v1391_v16 = vpop.permute.xlu1 %1390  ;;  %v1876_v49 = vld [vmem:[#allocation2 + $0xd8] sm:$0xff] }
 0x2a4   : > { %v1359_v59 = vpop.permute.xlu0 %1358  ;;  %v1860_v46 = vld [vmem:[#allocation2 + $0x58] sm:$0xff]  ;;  %1459 = vst.msk [vmem:[#allocation2 + $0xe0] sm:$0xff] %vm1430_vm7, %v1391_v16  ;;  %2710 = vmatmul.mubr.msk.f32.gmra.mrb[10].mxu1 %vm1893_vm10, %v1876_v49 }
 0x2a5   : > { %1443 = vst.msk [vmem:[#allocation2 + $0x60] sm:$0xff] %vm1430_vm7, %v1359_v59  ;;  %2686 = vmatmul.mubr.msk.f32.gmra.mrb[10].mxu0 %vm1893_vm10, %v1860_v46 }
 0x2a7   : > { %v1393_v4 = vpop.permute.xlu1 %1392 }
 0x2a8   : > { %v1361_v60 = vpop.permute.xlu0 %1360  ;;  %1460 = vst.msk [vmem:[#allocation2 + $0xe8] sm:$0xff] %vm1430_vm7, %v1393_v4 }
 0x2a9   : > { %1444 = vst.msk [vmem:[#allocation2 + $0x68] sm:$0xff] %vm1430_vm7, %v1361_v60 }
 0x2ab   : > { %v1584_v27 = vpop.permute.xlu1 %1583 }
 0x2ac   : > { %v1552_v48 = vpop.permute.xlu0 %1551  ;;  %1652 = vst.msk [vmem:[#allocation2 + $0xe0] sm:$0xff] %vm1623_vm8, %v1584_v27 }
 0x2ad   : > { %1636 = vst.msk [vmem:[#allocation2 + $0x60] sm:$0xff] %vm1623_vm8, %v1552_v48 }
 0x2af   : > { %v1006_v54 = vpop.permute.xlu1 %1005  ;;  %v2672_v1 = vpop.f32.mrb[0].mxu0 }
 0x2b0   : > { %v974_v11 = vpop.permute.xlu0 %973  ;;  %1072 = vst.msk [vmem:[#allocation2 + $0xf0] sm:$0xff] %vm1041_vm5, %v1006_v54  ;;  %v2696_v58 = vpop.f32.mrb[0].mxu1  ;;  %v2066_v29 = vadd.f32 %v2672_v1, %v4214_v26 }
 0x2b1   : > { %1056 = vst.msk [vmem:[#allocation2 + $0x70] sm:$0xff] %vm1041_vm5, %v974_v11  ;;  %v2146_v10 = vadd.f32 %v2696_v58, %v4214_v26  ;;  %v2060_v63 = vpop.f32.mrb[1].mxu0  ;;  %v2140_v23 = vpop.f32.mrb[1].mxu1 }
 0x2b2   : > { %v2061_v41 = vadd.f32 %v4214_v26, %v2060_v63  ;;  %v2141_v22 = vadd.f32 %v4214_v26, %v2140_v23  ;;  %2220 = vst [vmem:[%s4222_s4 + $0x8] sm:$0xff] %v2066_v29 }
 0x2b3   : > { %2236 = vst [vmem:[%s4222_s4 + $0x88] sm:$0xff] %v2146_v10  ;;  %v1586_v40 = vpop.permute.xlu1 %1585 }
 0x2b4   : > { %v1554_v18 = vpop.permute.xlu0 %1553  ;;  %2219 = vst [vmem:[%s4222_s4] sm:$0xff] %v2061_v41  ;;  %2235 = vst [vmem:[%s4222_s4 + $0x80] sm:$0xff] %v2141_v22 }
 0x2b5   : > { %1653 = vst.msk [vmem:[#allocation2 + $0xe8] sm:$0xff] %vm1623_vm8, %v1586_v40  ;;  %1637 = vst.msk [vmem:[#allocation2 + $0x68] sm:$0xff] %vm1623_vm8, %v1554_v18 }
 0x2b7   : > { %v1777_v55 = vpop.permute.xlu1 %1776 }
 0x2b8   : > { %v1745_v7 = vpop.permute.xlu0 %1744  ;;  %1845 = vst.msk [vmem:[#allocation2 + $0xe0] sm:$0xff] %vm1816_vm9, %v1777_v55 }
 0x2b9   : > { %1829 = vst.msk [vmem:[#allocation2 + $0x60] sm:$0xff] %vm1816_vm9, %v1745_v7 }
 0x2bb   : > { %v1008_v51 = vpop.permute.xlu1 %1007 }
 0x2bc   : > { %v976_v17 = vpop.permute.xlu0 %975  ;;  %1073 = vst.msk [vmem:[#allocation2 + $0xf8] sm:$0xff] %vm1041_vm5, %v1008_v51 }
 0x2bd   : > { %1057 = vst.msk [vmem:[#allocation2 + $0x78] sm:$0xff] %vm1041_vm5, %v976_v17 }
 0x2bf   : > { %v1199_v56 = vpop.permute.xlu1 %1198  ;;  %v1877_v6 = vld [vmem:[#allocation2 + $0xe0] sm:$0xff] }
 0x2c0   : > { %v1167_v57 = vpop.permute.xlu0 %1166  ;;  %v1861_v28 = vld [vmem:[#allocation2 + $0x60] sm:$0xff]  ;;  %1265 = vst.msk [vmem:[#allocation2 + $0xf0] sm:$0xff] %vm1234_vm6, %v1199_v56  ;;  %2712 = vmatprep.mubr.msk.f32.mxu1 %vm1893_vm10, %v1877_v6 }
 0x2c1   : > { %1249 = vst.msk [vmem:[#allocation2 + $0x70] sm:$0xff] %vm1234_vm6, %v1167_v57  ;;  %2688 = vmatprep.mubr.msk.f32.mxu0 %vm1893_vm10, %v1861_v28 }
 0x2c3   : > { %v1779_v50 = vpop.permute.xlu1 %1778 }
 0x2c4   : > { %v1747_v14 = vpop.permute.xlu0 %1746  ;;  %1846 = vst.msk [vmem:[#allocation2 + $0xe8] sm:$0xff] %vm1816_vm9, %v1779_v50 }
 0x2c5   : > { %1830 = vst.msk [vmem:[#allocation2 + $0x68] sm:$0xff] %vm1816_vm9, %v1747_v14 }
 0x2c7   : > { %v1201_v15 = vpop.permute.xlu1 %1200 }
 0x2c8   : > { %v1169_v31 = vpop.permute.xlu0 %1168  ;;  %1266 = vst.msk [vmem:[#allocation2 + $0xf8] sm:$0xff] %vm1234_vm6, %v1201_v15 }
 0x2c9   : > { %1250 = vst.msk [vmem:[#allocation2 + $0x78] sm:$0xff] %vm1234_vm6, %v1169_v31 }
 0x2cb   : > { %v1395_v0 = vpop.permute.xlu1 %1394  ;;  %v1878_v45 = vld [vmem:[#allocation2 + $0xe8] sm:$0xff] }
 0x2cc   : > { %v1363_v13 = vpop.permute.xlu0 %1362  ;;  %v1862_v3 = vld [vmem:[#allocation2 + $0x68] sm:$0xff]  ;;  %1461 = vst.msk [vmem:[#allocation2 + $0xf0] sm:$0xff] %vm1430_vm7, %v1395_v0  ;;  %2713 = vmatmul.mubr.msk.f32.gmra.mrb[12].mxu1 %vm1893_vm10, %v1878_v45 }
 0x2cd   : > { %1445 = vst.msk [vmem:[#allocation2 + $0x70] sm:$0xff] %vm1430_vm7, %v1363_v13  ;;  %2689 = vmatmul.mubr.msk.f32.gmra.mrb[12].mxu0 %vm1893_vm10, %v1862_v3 }
 0x2cf   : > { %v1397_v25 = vpop.permute.xlu1 %1396 }
 0x2d0   : > { %v1365_v2 = vpop.permute.xlu0 %1364  ;;  %1462 = vst.msk [vmem:[#allocation2 + $0xf8] sm:$0xff] %vm1430_vm7, %v1397_v25 }
 0x2d1   : > { %1446 = vst.msk [vmem:[#allocation2 + $0x78] sm:$0xff] %vm1430_vm7, %v1365_v2 }
 0x2d3   : > { %v1588_v53 = vpop.permute.xlu1 %1587 }
 0x2d4   : > { %v1556_v43 = vpop.permute.xlu0 %1555  ;;  %1654 = vst.msk [vmem:[#allocation2 + $0xf0] sm:$0xff] %vm1623_vm8, %v1588_v53 }
 0x2d5   : > { %1638 = vst.msk [vmem:[#allocation2 + $0x70] sm:$0xff] %vm1623_vm8, %v1556_v43 }
 0x2d7   : > { %v1590_v52 = vpop.permute.xlu1 %1589  ;;  %v2675_v24 = vpop.f32.mrb[2].mxu0 }
 0x2d8   : > { %v1558_v44 = vpop.permute.xlu0 %1557  ;;  %1655 = vst.msk [vmem:[#allocation2 + $0xf8] sm:$0xff] %vm1623_vm8, %v1590_v52  ;;  %v2699_v32 = vpop.f32.mrb[2].mxu1  ;;  %v2076_v42 = vadd.f32 %v2675_v24, %v4214_v26 }
 0x2d9   : > { %1639 = vst.msk [vmem:[#allocation2 + $0x78] sm:$0xff] %vm1623_vm8, %v1558_v44  ;;  %v2156_v9 = vadd.f32 %v2699_v32, %v4214_v26  ;;  %v2070_v8 = vpop.f32.mrb[3].mxu0  ;;  %v2150_v62 = vpop.f32.mrb[3].mxu1 }
 0x2da   : > { %v2071_v20 = vadd.f32 %v4214_v26, %v2070_v8  ;;  %v2151_v61 = vadd.f32 %v4214_v26, %v2150_v62  ;;  %2222 = vst [vmem:[%s4222_s4 + $0x18] sm:$0xff] %v2076_v42 }
 0x2db   : > { %2238 = vst [vmem:[%s4222_s4 + $0x98] sm:$0xff] %v2156_v9  ;;  %v1781_v19 = vpop.permute.xlu1 %1780 }
 0x2dc   : > { %v1749_v39 = vpop.permute.xlu0 %1748  ;;  %2221 = vst [vmem:[%s4222_s4 + $0x10] sm:$0xff] %v2071_v20  ;;  %2237 = vst [vmem:[%s4222_s4 + $0x90] sm:$0xff] %v2151_v61 }
 0x2dd   : > { %1847 = vst.msk [vmem:[#allocation2 + $0xf0] sm:$0xff] %vm1816_vm9, %v1781_v19  ;;  %1831 = vst.msk [vmem:[#allocation2 + $0x70] sm:$0xff] %vm1816_vm9, %v1749_v39 }
 0x2df   : > { %v1783_v33 = vpop.permute.xlu1 %1782 }
 0x2e0   : > { %v1751_v34 = vpop.permute.xlu0 %1750  ;;  %1848 = vst.msk [vmem:[#allocation2 + $0xf8] sm:$0xff] %vm1816_vm9, %v1783_v33 }
 0x2e1   : > { %1832 = vst.msk [vmem:[#allocation2 + $0x78] sm:$0xff] %vm1816_vm9, %v1751_v34 }
 0x2e4   : > { %v1863_v5 = vld [vmem:[#allocation2 + $0x70] sm:$0xff] }
 0x2e5   : > { %v1879_v38 = vld [vmem:[#allocation2 + $0xf0] sm:$0xff]  ;;  %2691 = vmatprep.mubr.msk.f32.mxu0 %vm1893_vm10, %v1863_v5 }
 0x2e6   : > { %2715 = vmatprep.mubr.msk.f32.mxu1 %vm1893_vm10, %v1879_v38 }
 0x2e7   : > { %v1880_v47 = vld [vmem:[#allocation2 + $0xf8] sm:$0xff] }
 0x2e8   : > { %v1864_v35 = vld [vmem:[#allocation2 + $0x78] sm:$0xff]  ;;  %2716 = vmatmul.mubr.msk.f32.gmra.mrb[14].mxu1 %vm1893_vm10, %v1880_v47 }
 0x2e9   : > { %2692 = vmatmul.mubr.msk.f32.gmra.mrb[14].mxu0 %vm1893_vm10, %v1864_v35 }
 0x2ff   : > { %v2678_v36 = vpop.f32.mrb[4].mxu0 }
 0x300   : > { %v2702_v37 = vpop.f32.mrb[4].mxu1  ;;  %v2086_v21 = vadd.f32 %v2678_v36, %v4214_v26  ;;  %v2080_v12 = vpop.f32.mrb[5].mxu0 }
 0x301   : > { %v2166_v30 = vadd.f32 %v2702_v37, %v4214_v26  ;;  %v2160_v16 = vpop.f32.mrb[5].mxu1  ;;  %v2081_v59 = vadd.f32 %v4214_v26, %v2080_v12 }
 0x302   : > { %v2161_v46 = vadd.f32 %v4214_v26, %v2160_v16  ;;  %2224 = vst [vmem:[%s4222_s4 + $0x28] sm:$0xff] %v2086_v21 }
 0x303   : > { %2240 = vst [vmem:[%s4222_s4 + $0xa8] sm:$0xff] %v2166_v30  ;;  %2223 = vst [vmem:[%s4222_s4 + $0x20] sm:$0xff] %v2081_v59 }
 0x304   : > { %2239 = vst [vmem:[%s4222_s4 + $0xa0] sm:$0xff] %v2161_v46 }
 0x327   : > { %v2705_v4 = vpop.f32.mrb[6].mxu1 }
 0x328   : > { %v2681_v49 = vpop.f32.mrb[6].mxu0  ;;  %v2176_v27 = vadd.f32 %v2705_v4, %v4214_v26  ;;  %v2170_v54 = vpop.f32.mrb[7].mxu1 }
 0x329   : > { %v2096_v60 = vadd.f32 %v2681_v49, %v4214_v26  ;;  %v2090_v48 = vpop.f32.mrb[7].mxu0  ;;  %v2171_v1 = vadd.f32 %v4214_v26, %v2170_v54 }
 0x32a   : > { %v2091_v11 = vadd.f32 %v4214_v26, %v2090_v48  ;;  %2242 = vst [vmem:[%s4222_s4 + $0xb8] sm:$0xff] %v2176_v27 }
 0x32b   : > { %2226 = vst [vmem:[%s4222_s4 + $0x38] sm:$0xff] %v2096_v60  ;;  %2241 = vst [vmem:[%s4222_s4 + $0xb0] sm:$0xff] %v2171_v1 }
 0x32c   : > { %2225 = vst [vmem:[%s4222_s4 + $0x30] sm:$0xff] %v2091_v11 }
 0x34f   : > { %v2708_v29 = vpop.f32.mrb[8].mxu1 }
 0x350   : > { %v2684_v58 = vpop.f32.mrb[8].mxu0  ;;  %v2186_v63 = vadd.f32 %v2708_v29, %v4214_v26  ;;  %v2180_v41 = vpop.f32.mrb[9].mxu1 }
 0x351   : > { %v2106_v10 = vadd.f32 %v2684_v58, %v4214_v26  ;;  %v2100_v23 = vpop.f32.mrb[9].mxu0  ;;  %v2181_v40 = vadd.f32 %v4214_v26, %v2180_v41 }
 0x352   : > { %v2101_v22 = vadd.f32 %v4214_v26, %v2100_v23  ;;  %2244 = vst [vmem:[%s4222_s4 + $0xc8] sm:$0xff] %v2186_v63 }
 0x353   : > { %2228 = vst [vmem:[%s4222_s4 + $0x48] sm:$0xff] %v2106_v10  ;;  %2243 = vst [vmem:[%s4222_s4 + $0xc0] sm:$0xff] %v2181_v40 }
 0x354   : > { %2227 = vst [vmem:[%s4222_s4 + $0x40] sm:$0xff] %v2101_v22 }
 0x377   : > { %v2711_v55 = vpop.f32.mrb[10].mxu1 }
 0x378   : > { %v2687_v18 = vpop.f32.mrb[10].mxu0  ;;  %v2196_v51 = vadd.f32 %v2711_v55, %v4214_v26  ;;  %v2190_v56 = vpop.f32.mrb[11].mxu1 }
 0x379   : > { %v2116_v7 = vadd.f32 %v2687_v18, %v4214_v26  ;;  %v2110_v17 = vpop.f32.mrb[11].mxu0  ;;  %v2191_v28 = vadd.f32 %v4214_v26, %v2190_v56 }
 0x37a   : > { %v2111_v57 = vadd.f32 %v4214_v26, %v2110_v17  ;;  %2246 = vst [vmem:[%s4222_s4 + $0xd8] sm:$0xff] %v2196_v51 }
 0x37b   : > { %2230 = vst [vmem:[%s4222_s4 + $0x58] sm:$0xff] %v2116_v7  ;;  %2245 = vst [vmem:[%s4222_s4 + $0xd0] sm:$0xff] %v2191_v28 }
 0x37c   : > { %2229 = vst [vmem:[%s4222_s4 + $0x50] sm:$0xff] %v2111_v57 }
 0x39f   : > { %v2714_v50 = vpop.f32.mrb[12].mxu1 }
 0x3a0   : > { %v2690_v6 = vpop.f32.mrb[12].mxu0  ;;  %v2206_v15 = vadd.f32 %v2714_v50, %v4214_v26  ;;  %v2200_v0 = vpop.f32.mrb[13].mxu1 }
 0x3a1   : > { %v2126_v14 = vadd.f32 %v2690_v6, %v4214_v26  ;;  %v2120_v31 = vpop.f32.mrb[13].mxu0  ;;  %v2201_v3 = vadd.f32 %v4214_v26, %v2200_v0 }
 0x3a2   : > { %v2121_v13 = vadd.f32 %v4214_v26, %v2120_v31  ;;  %2248 = vst [vmem:[%s4222_s4 + $0xe8] sm:$0xff] %v2206_v15 }
 0x3a3   : > { %2232 = vst [vmem:[%s4222_s4 + $0x68] sm:$0xff] %v2126_v14  ;;  %2247 = vst [vmem:[%s4222_s4 + $0xe0] sm:$0xff] %v2201_v3 }
 0x3a4   : > { %2231 = vst [vmem:[%s4222_s4 + $0x60] sm:$0xff] %v2121_v13 }
 0x3bb   : > { %v2717_v25 = vpop.f32.mrb[14].mxu1 }
 0x3bc   : > { %v2693_v45 = vpop.f32.mrb[14].mxu0  ;;  %v2216_v53 = vadd.f32 %v2717_v25, %v4214_v26  ;;  %v2210_v52 = vpop.f32.mrb[15].mxu1 }
 0x3bd   : > { %v2136_v2 = vadd.f32 %v2693_v45, %v4214_v26  ;;  %v2130_v43 = vpop.f32.mrb[15].mxu0  ;;  %v2211_v24 = vadd.f32 %v4214_v26, %v2210_v52 }
 0x3be   : > { %v2131_v44 = vadd.f32 %v4214_v26, %v2130_v43  ;;  %2250 = vst [vmem:[%s4222_s4 + $0xf8] sm:$0xff] %v2216_v53 }
 0x3bf   : > { %2234 = vst [vmem:[%s4222_s4 + $0x78] sm:$0xff] %v2136_v2  ;;  %2249 = vst [vmem:[%s4222_s4 + $0xf0] sm:$0xff] %v2211_v24 }
 0x3c0   : > { %2233 = vst [vmem:[%s4222_s4 + $0x70] sm:$0xff] %v2131_v44 }
 0x3c1   : > { %2928 = shalt.err (!%p2925_p2)
}
 0x3c2   : > { %s2929_s18 = scalar_lea.hbm %s4315_s8, 4096  ;;  %s2933_s10 = scalar_lea.hbm %s4376_s3, 8192 }
 0x3c3   : > { %p2930_p0 = scmp.ne.s32.totalorder %s4315_s8, %s2929_s18  ;;  %p2934_p6 = scmp.lt.u32.totalorder %s4315_s8, %s4376_s3 }
 0x3c4   : > { %p2935_p7 = scmp.lt.u32.totalorder %s2933_s10, %s2929_s18  ;;  %p2937_p8 = scmp.lt.u32.totalorder %s2929_s18, %s4315_s8 }
 0x3c5   : > { %p2931_p4 = pnand %p2930_p0, %p4405_p12 }
 0x3c6   : > { %p2936_p11 = por %p2935_p7, %p2934_p6 }
 0x3c7   : > { %p2932_p13 = pneg %p2931_p4 }
 0x3c8   : > { %p2938_p1 = por %p2937_p8, %p2936_p11 }
 0x3ca   : > { %p2939_p10 = pnand %p2938_p1, %p2932_p13 }
 0x3cc   : > { %2942 = shalt.err (!%p2939_p10)
}
 0x3cd   : > { %s3017_s9 = smov 128  }
 0x3ce   : > { %2745 = dma.vmem_to_hbm [thread:$0]  (%p4405_p12), %s4319_s28, 4096, %s4315_s8, %s2252_s15, %s3017_s9, %s3017_s9, %s3009_s20  }
 0x3cf PF: > { %s2282_s29 = sand.u32 1, %s2981_s12   ;;  %p4406_p3 = scmp.ne.s32.totalorder %s4390_s23, 0 }
 0x3d0   : > { %p4407_p5 = scmp.ge.s32.totalorder %s3001_s17, 2  ;;  %s2283_s7 = scalar_lea.sflag [#allocation5], %s2282_s29 }
 0x3d2   : > { %p2759_p9 = pnand %p4407_p5, %p4406_p3 }
 0x3d4   : > { %2976 = dma.done.wait (!%p2759_p9), %s2283_s7, 4096  }
 0x3d5   : > { %2978 = vsyncadd (!%p2759_p9), %s2283_s7, 4294963200  ;;  %s20_s17 = sadd.s32 1, %s3001_s17   ;;  %s4408_s12 = smov %s2985_s13 }
 0x3d6   : > { %p17_p2 = scmp.ge.s32.totalorder %s20_s17, 4   ;;  %s4409_s13 = smov %s2989_s14 }
 0x3d7   : > { %s4410_s14 = smov %s3187_s6  ;;  %s4411_s15 = smov %s2997_s16 }
 0x3d8   : > { %s4412_s16 = smov %s4414_s25  ;;  %19 = sbr.rel (!%p17_p2) target bundleno = 7 (0x7), region = 88 }
 0x3df   :  { %2288 = vsyncpa [#allocation4], 1 }
 0x3e0   :  { %2290 = vsyncpa [#allocation4 + $0x1], 1 }
 0x3e1   :  { %2291 = vsyncpa [#allocation7], 1 }
 0x3e2   :  { %2292 = vsyncpa [#allocation5], 1 }
 0x3e3   :  { %2294 = vsyncpa [#allocation5 + $0x1], 1 }

</bundles_post_ra>
